<compile_context>
chip_gen: v7x
topology: tpu7x:2x2x1
jax: 0.10.0
libtpu: 0.0.40
codegen_flags: <defaults>
</compile_context>

<pallas_src>
import functools
import numpy as np

import jax
import jax.numpy as jnp
from jax.experimental import pallas as pl
from jax.experimental.pallas import tpu as pltpu


def _round_up(x, m):
    return ((x + m - 1) // m) * m


# ---------------------------------------------------------------------------
# Kernel: fused LayerNorm(4C) + Linear(4C -> 2C, no bias)
# ---------------------------------------------------------------------------
def _patch_merging_kernel(x_ref, g_ref, b_ref, w_ref, out_ref):
    x = x_ref[...].astype(jnp.float32)                    # [tile_m, 4C]
    # LayerNorm over the channel (lane) axis, eps = 1e-5 (PyTorch default).
    mu = jnp.mean(x, axis=-1, keepdims=True)
    var = jnp.mean(jnp.square(x - mu), axis=-1, keepdims=True)
    xn = (x - mu) * jax.lax.rsqrt(var + 1e-5)
    xn = xn * g_ref[0] + b_ref[0]
    # Reduction: bf16 operands -> MXU, f32 accumulation.
    y = jnp.dot(xn.astype(jnp.bfloat16), w_ref[...],
                preferred_element_type=jnp.float32)       # [tile_m, 2C]
    out_ref[...] = y.astype(out_ref.dtype)


def _patch_merging_pallas(x2d, gamma, beta, w_t_bf16, *, tile_m=256):
    """x2d: [M, 4C] merged tokens; w_t_bf16: [4C, 2C] bf16.  Returns [M, 2C]."""
    M, C4 = x2d.shape
    C2 = w_t_bf16.shape[1]

    # Large row tile (sublane-aligned), but never larger than the row count.
    tm = min(tile_m, _round_up(M, 8))
    n_tiles = pl.cdiv(M, tm)
    # Keep the parallel grid even when multi-step (v7x: 2 TensorCores/chip).
    if n_tiles > 1 and n_tiles % 2 == 1:
        n_tiles += 1
    m_pad = n_tiles * tm
    if m_pad != M:
        x2d = jnp.pad(x2d, ((0, m_pad - M), (0, 0)))      # zero rows, sliced off below

    out = pl.pallas_call(
        _patch_merging_kernel,
        out_shape=jax.ShapeDtypeStruct((m_pad, C2), x2d.dtype),
        grid_spec=pltpu.PrefetchScalarGridSpec(
            num_scalar_prefetch=0,
            grid=(n_tiles,),
            in_specs=[
                pl.BlockSpec((tm, C4), lambda i: (i, 0)),   # token rows
                pl.BlockSpec((1, C4), lambda i: (0, 0)),    # LN gamma
                pl.BlockSpec((1, C4), lambda i: (0, 0)),    # LN beta
                pl.BlockSpec((C4, C2), lambda i: (0, 0)),   # W^T (bf16), resident
            ],
            out_specs=pl.BlockSpec((tm, C2), lambda i: (i, 0)),
        ),
        compiler_params=pltpu.CompilerParams(
            dimension_semantics=("parallel",)),
        # At production dims (C >= 768) raise vmem_limit_bytes and/or mark the
        # weight spec pipeline_mode=pl.Buffered(1); at these sizes the default
        # 32 MiB scoped VMEM is ample.
    )(x2d, gamma, beta, w_t_bf16)

    return out[:M] if m_pad != M else out


# ---------------------------------------------------------------------------
# Full PatchMerging forward (mirrors the PyTorch module)
# ---------------------------------------------------------------------------
def patch_merging_forward(x, params, *, H, W, tile_m=256):
    B, L, C = x.shape
    assert L == H * W, "input feature has wrong size"
    assert H % 2 == 0 and W % 2 == 0, "H and W must be even"

    xr = x.reshape(B, H, W, C)
    x0 = xr[:, 0::2, 0::2, :]                             # [B, H/2, W/2, C]
    x1 = xr[:, 1::2, 0::2, :]
    x2 = xr[:, 0::2, 1::2, :]
    x3 = xr[:, 1::2, 1::2, :]
    xc = jnp.concatenate([x0, x1, x2, x3], axis=-1)       # [B, H/2, W/2, 4C]
    M = B * (H // 2) * (W // 2)
    xc = xc.reshape(M, 4 * C)

    # nn.Linear weight is [2C, 4C]; pass as [4C, 2C] bf16 for the MXU.
    w_t = params["w_red"].T.astype(jnp.bfloat16)
    y = _patch_merging_pallas(xc, params["gamma"], params["beta"], w_t,
                              tile_m=tile_m)              # [M, 2C]
    return y.reshape(B, (H // 2) * (W // 2), 2 * C)


def patch_merging_reference(x, params, *, H, W):
    """Pure-JAX f32 reference (mirrors the torch forward exactly)."""
    B, L, C = x.shape
    xr = x.reshape(B, H, W, C)
    x0 = xr[:, 0::2, 0::2, :]
    x1 = xr[:, 1::2, 0::2, :]
    x2 = xr[:, 0::2, 1::2, :]
    x3 = xr[:, 1::2, 1::2, :]
    xc = jnp.concatenate([x0, x1, x2, x3], axis=-1).reshape(B, -1, 4 * C)
    mu = jnp.mean(xc, axis=-1, keepdims=True)
    var = jnp.mean(jnp.square(xc - mu), axis=-1, keepdims=True)
    xn = (xc - mu) * jax.lax.rsqrt(var + 1e-5)
    xn = xn * params["gamma"][0] + params["beta"][0]
    return jnp.einsum("blk,ok->blo", xn, params["w_red"])


def init_params(key, *, dim):
    C4, C2 = 4 * dim, 2 * dim
    kw, kg, kb = jax.random.split(key, 3)
    bound = 1.0 / np.sqrt(C4)
    w = jax.random.uniform(kw, (C2, C4), jnp.float32, -bound, bound)
    # PyTorch LayerNorm defaults are gamma=1, beta=0; perturb slightly so the
    # affine path is actually exercised by the numerical check.
    gamma = 1.0 + 0.1 * jax.random.normal(kg, (1, C4), jnp.float32)
    beta = 0.1 * jax.random.normal(kb, (1, C4), jnp.float32)
    return dict(w_red=w, gamma=gamma, beta=beta)


if __name__ == "__main__":
    # Small but representative: C=64 -> LN dim 4C=256, output dim 2C=128
    # (lane-dense); H=W=32, B=2 -> M=512 merged tokens -> grid=(2,) with
    # tile_m=256 (exercises the pipelined multi-step path).
    B, H, W, C = 2, 32, 32, 64

    key = jax.random.PRNGKey(0)
    kx, kp = jax.random.split(key)
    x = jax.random.normal(kx, (B, H * W, C), dtype=jnp.float32)
    params = init_params(kp, dim=C)

    fwd = jax.jit(functools.partial(patch_merging_forward, H=H, W=W, tile_m=256))
    out = fwd(x, params)
    jax.block_until_ready(out)

    assert out.shape == (B, (H // 2) * (W // 2), 2 * C)
    assert out.dtype == jnp.float32
    assert bool(jnp.all(jnp.isfinite(out)))
    ref = patch_merging_reference(x, params, H=H, W=W)
    np.testing.assert_allclose(np.asarray(out), np.asarray(ref),
                               rtol=2e-2, atol=2e-2)
    print("KERNEL_OK")
</pallas_src>

<mosaic_0001>
module attributes {stable_mosaic.version = 11 : i64} {
  func.func @_patch_merging_kernel(%arg0: i32, %arg1: memref<256x256xf32, #tpu.memory_space<vmem>>, %arg2: memref<1x256xf32, #tpu.memory_space<vmem>>, %arg3: memref<1x256xf32, #tpu.memory_space<vmem>>, %arg4: memref<256x128xbf16, #tpu.memory_space<vmem>>, %arg5: memref<256x128xf32, #tpu.memory_space<vmem>>) attributes {dimension_semantics = [#tpu.dimension_semantics<parallel>], iteration_bounds = array<i64: 2>, scalar_prefetch = 0 : i64, scratch_operands = 0 : i64, tpu.core_type = #tpu.core_type<tc>, window_params = [{transform_indices = @transform_0, window_bounds = array<i64: 256, 256>}, {pipeline_mode = #tpu.pipeline_mode<synchronous>, transform_indices = @transform_1, window_bounds = array<i64: 1, 256>}, {pipeline_mode = #tpu.pipeline_mode<synchronous>, transform_indices = @transform_2, window_bounds = array<i64: 1, 256>}, {pipeline_mode = #tpu.pipeline_mode<synchronous>, transform_indices = @transform_3, window_bounds = array<i64: 256, 128>}, {transform_indices = @transform_4, window_bounds = array<i64: 256, 128>}]} {
    %c0 = arith.constant 0 : index
    %c0_0 = arith.constant 0 : index
    %0 = vector.load %arg1[%c0, %c0_0] : memref<256x256xf32, #tpu.memory_space<vmem>>, vector<256x256xf32>
    %cst = arith.constant dense<0.000000e+00> : vector<256xf32>
    %1 = vector.multi_reduction <add>, %0, %cst [1] : vector<256x256xf32> to vector<256xf32>
    %2 = vector.shape_cast %1 : vector<256xf32> to vector<256x1xf32>
    %cst_1 = arith.constant 2.560000e+02 : f32
    %3 = vector.broadcast %cst_1 : f32 to vector<256x1xf32>
    %4 = arith.divf %2, %3 : vector<256x1xf32>
    %5 = vector.broadcast %4 : vector<256x1xf32> to vector<256x256xf32>
    %6 = arith.subf %0, %5 : vector<256x256xf32>
    %7 = arith.mulf %6, %6 : vector<256x256xf32>
    %cst_2 = arith.constant dense<0.000000e+00> : vector<256xf32>
    %8 = vector.multi_reduction <add>, %7, %cst_2 [1] : vector<256x256xf32> to vector<256xf32>
    %9 = vector.shape_cast %8 : vector<256xf32> to vector<256x1xf32>
    %cst_3 = arith.constant 2.560000e+02 : f32
    %10 = vector.broadcast %cst_3 : f32 to vector<256x1xf32>
    %11 = arith.divf %9, %10 : vector<256x1xf32>
    %12 = vector.broadcast %4 : vector<256x1xf32> to vector<256x256xf32>
    %13 = arith.subf %0, %12 : vector<256x256xf32>
    %cst_4 = arith.constant 9.99999974E-6 : f32
    %14 = vector.broadcast %cst_4 : f32 to vector<256x1xf32>
    %15 = arith.addf %11, %14 : vector<256x1xf32>
    %16 = math.rsqrt %15 : vector<256x1xf32>
    %17 = vector.broadcast %16 : vector<256x1xf32> to vector<256x256xf32>
    %18 = arith.mulf %13, %17 : vector<256x256xf32>
    %c0_5 = arith.constant 0 : index
    %c0_6 = arith.constant 0 : index
    %19 = vector.load %arg2[%c0_5, %c0_6] : memref<1x256xf32, #tpu.memory_space<vmem>>, vector<1x256xf32>
    %20 = vector.shape_cast %19 : vector<1x256xf32> to vector<256xf32>
    %21 = vector.shape_cast %20 : vector<256xf32> to vector<1x256xf32>
    %22 = vector.broadcast %21 : vector<1x256xf32> to vector<256x256xf32>
    %23 = arith.mulf %18, %22 : vector<256x256xf32>
    %c0_7 = arith.constant 0 : index
    %c0_8 = arith.constant 0 : index
    %24 = vector.load %arg3[%c0_7, %c0_8] : memref<1x256xf32, #tpu.memory_space<vmem>>, vector<1x256xf32>
    %25 = vector.shape_cast %24 : vector<1x256xf32> to vector<256xf32>
    %26 = vector.shape_cast %25 : vector<256xf32> to vector<1x256xf32>
    %27 = vector.broadcast %26 : vector<1x256xf32> to vector<256x256xf32>
    %28 = arith.addf %23, %27 : vector<256x256xf32>
    %29 = arith.truncf %28 : vector<256x256xf32> to vector<256x256xbf16>
    %c0_9 = arith.constant 0 : index
    %c0_10 = arith.constant 0 : index
    %30 = vector.load %arg4[%c0_9, %c0_10] : memref<256x128xbf16, #tpu.memory_space<vmem>>, vector<256x128xbf16>
    %cst_11 = arith.constant dense<0.000000e+00> : vector<256x128xf32>
    %31 = tpu.matmul %29, %30, %cst_11 {dimension_numbers = #tpu.dot_dimension_numbers<[1], [0], [0], [1], [0, 0, 1, 1], [], []>} : vector<256x256xbf16>, vector<256x128xbf16>, vector<256x128xf32> -> vector<256x128xf32>
    %c0_12 = arith.constant 0 : index
    %c0_13 = arith.constant 0 : index
    %32 = vector.load %arg5[%c0_12, %c0_13] : memref<256x128xf32, #tpu.memory_space<vmem>>, vector<256x128xf32>
    tpu.vector_store %arg5[%c0_12, %c0_13], %31 {strides = array<i32>} : memref<256x128xf32, #tpu.memory_space<vmem>>, vector<256x128xf32>,
    return
  }
  func.func @transform_0(%arg0: i32) -> (i32, i32) {
    %c0_i32 = arith.constant 0 : i32
    %c0_i32_0 = arith.constant 0 : i32
    return %arg0, %c0_i32 : i32, i32
  }
  func.func @transform_1(%arg0: i32) -> (i32, i32) {
    %c0_i32 = arith.constant 0 : i32
    %c0_i32_0 = arith.constant 0 : i32
    %c0_i32_1 = arith.constant 0 : i32
    return %c0_i32, %c0_i32_0 : i32, i32
  }
  func.func @transform_2(%arg0: i32) -> (i32, i32) {
    %c0_i32 = arith.constant 0 : i32
    %c0_i32_0 = arith.constant 0 : i32
    %c0_i32_1 = arith.constant 0 : i32
    return %c0_i32, %c0_i32_0 : i32, i32
  }
  func.func @transform_3(%arg0: i32) -> (i32, i32) {
    %c0_i32 = arith.constant 0 : i32
    %c0_i32_0 = arith.constant 0 : i32
    %c0_i32_1 = arith.constant 0 : i32
    return %c0_i32, %c0_i32_0 : i32, i32
  }
  func.func @transform_4(%arg0: i32) -> (i32, i32) {
    %c0_i32 = arith.constant 0 : i32
    %c0_i32_0 = arith.constant 0 : i32
    return %arg0, %c0_i32 : i32, i32
  }
}

</mosaic_0001>

<bundles_post_ra>
// kernel: patch_merging_forward.1
= control target key start
LH: loop header
LB: loop body
LE: loop exit
PB: predicated region body
PF: predicated region fallthrough
CT: control target
= control target key end

     0   :  { %9 = vsyncpa [#allocation3], 0  ;;  %s2770_s0 = inlined_call_operand.vmem [shape: f32[512,256], index: 0, kind: input, shape index: {}]   ;;  %s2771_s1 = inlined_call_operand.vmem [shape: f32[1,256], index: 1, kind: input, shape index: {}]   ;;  %s2772_s2 = inlined_call_operand.vmem [shape: f32[1,256], index: 2, kind: input, shape index: {}]   ;;  %s2773_s3 = inlined_call_operand.vmem [shape: bf16[256,128], index: 3, kind: input, shape index: {}]   ;;  %s2774_s4 = inlined_call_operand.hbm [shape: f32[512,128], index: 4, kind: output, shape index: {}]  }
   0x1   :  { %11 = vsyncpa [#allocation3 + $0x1], 0  ;;  %s1733_s15 = smov 0   ;;  %s1735_s16 = smov 0  }
   0x2   :  { %s1737_s17 = smov 0   ;;  %s1739_s18 = smov 0  }
   0x3 LB: > { %s1754_s19 = sadd.s32 4294967295, %s1703_s18   ;;  %s1361_s20 = sadd.s32 4294967294, %s1703_s18   ;;  %s1703_s18 = sphi %s1739_s18, %s2897_s18   ;;  %s1699_s17 = sphi %s1737_s17, %s2896_s17   ;;  %s1695_s16 = sphi %s1735_s16, %s2895_s16   ;;  %s1691_s15 = sphi %s1733_s15, %s2894_s15  }
   0x4   : > { %s1758_s21 = sadd.s32 1, %s1703_s18   ;;  %s113_s22 = sadd.s32 1, %s1699_s17 }
   0x5   : > { %s110_s23 = ssub.s32 %s1703_s18, %s1758_s21  ;;  %p123_p0 = scmp.ne.s32.totalorder %s1699_s17, %s1695_s16 }
   0x6   : > { %p111_p1 = scmp.eq.s32.totalorder %s110_s23, 0  ;;  %p124_p2 = scmp.eq.s32.totalorder %s1754_s19, 1 }
   0x7   : > { %p129_p3 = scmp.ne.s32.totalorder %s1695_s16, %s1691_s15  ;;  %p130_p4 = scmp.eq.s32.totalorder %s1361_s20, 1 }
   0x8   : > { %s1769_s24 = scalar_select %p111_p1, %s1699_s17, %s113_s22  }
   0x9   : > { %p1771_p5 = por %p124_p2, %p123_p0  ;;  %p1775_p6 = por %p130_p4, %p129_p3 }
   0xa   : > { %p1364_p7 = scmp.ge.s32.totalorder %s1703_s18, 1  ;;  %p167_p8 = scmp.lt.s32.totalorder %s1703_s18, 3 }
   0xc   : > { %p168_p9 = pnand %p1364_p7, %p167_p8 }
   0xe   : > { %171 = sbr.rel (%p168_p9) target bundleno = 654 (0x28e), region = 36 }
  0x15   : > { %s1366_s27 = sshll.u32 %s1754_s19, 5  ;;  %s191_s8 = sand.u32 1, %s1695_s16  }
  0x16   : > { %p195_p10 = scmp.lt.s32.totalorder %s1366_s27, 63  ;;  %s1365_s9 = sshll.u32 %s191_s8, 8 }
  0x17   : > { %s2684_s10 = scalar_lea.vmem [#allocation2], %s1365_s9  ;;  %s1391_s11 = sshll.u32 %s1754_s19, 12 }
  0x18   : > { %s2899_s27 = smov (!%p195_p10, %s1366_s27), 63  ;;  %s1299_s12 = sshll.u32 %s2684_s10, 4  ;;  %s2723_s12 = int_to_ptr.vmem [resolvable:$true] %s1299_s12 }
  0x19   : > { %s1390_s28 = sshll.u32 %s2899_s27, 4  ;;  %s2721_s20 = scalar_lea.hbm %s2774_s4, %s1391_s11 }
  0x1a   : > { %s1785_s5 = scalar_lea.vmem %s2770_s0, %s1390_s28  ;;  %s2729_s19 = scalar_lea.sflag [#allocation3], %s191_s8 }
  0x1b   : > { %v1788_v0 = vld [vmem:[%s1785_s5] sm:$0xff]  ;;  %v1791_v1 = vld [vmem:[%s1785_s5 + $0x8] sm:$0xff]  ;;  %v1802_v5 = vld [vmem:[%s1785_s5 + $0x10] sm:$0xff]  ;;  %s1641_s22 = scalar_lea.vmem %s2723_s12, 4096  ;;  %s1705_s23 = smov [#allocation2]  }
  0x1c   : > { %v1794_v2 = vld [vmem:[%s1785_s5 + $0x100] sm:$0xff]  ;;  %v267_v3 = vadd.f32 %v1791_v1, %v1788_v0  ;;  %v1799_v4 = vld [vmem:[%s1785_s5 + $0x108] sm:$0xff]  ;;  %v1805_v6 = vld [vmem:[%s1785_s5 + $0x18] sm:$0xff]  ;;  %p1642_p11 = scmp.ne.s32.totalorder %s2723_s12, %s1641_s22  ;;  %s1645_s27 = sshll.u32 %s1705_s23, 4  ;;  %s1646_s27 = int_to_ptr.vmem [resolvable:$false] %s1645_s27 }
  0x1d   : > { %v315_v7 = vadd.f32 %v1799_v4, %v1794_v2  ;;  %v1810_v8 = vld [vmem:[%s1785_s5 + $0x110] sm:$0xff]  ;;  %v1813_v9 = vld [vmem:[%s1785_s5 + $0x118] sm:$0xff]  ;;  %v270_v10 = vadd.f32 %v1805_v6, %v1802_v5  ;;  %v1820_v12 = vld [vmem:[%s1785_s5 + $0x20] sm:$0xff]  ;;  %s1647_s28 = scalar_lea.vmem %s1646_s27, 8192  ;;  %p1648_p0 = scmp.lt.s32.totalorder %s2723_s12, %s1646_s27 }
  0x1e   : > { %268 = vadd.xlane.f32.xlu0 %v267_v3  ;;  %v318_v11 = vadd.f32 %v1813_v9, %v1810_v8  ;;  %v1823_v13 = vld [vmem:[%s1785_s5 + $0x28] sm:$0xff]  ;;  %v1826_v14 = vld [vmem:[%s1785_s5 + $0x30] sm:$0xff]  ;;  %v1829_v15 = vld [vmem:[%s1785_s5 + $0x38] sm:$0xff]  ;;  %p1643_p12 = pnand %p1642_p11, %p1771_p5  ;;  %p1649_p1 = scmp.lt.s32.totalorder %s1647_s28, %s1641_s22 }
  0x1f   : > { %316 = vadd.xlane.f32.xlu1 %v315_v7  ;;  %v273_v16 = vadd.f32 %v1823_v13, %v1820_v12  ;;  %v276_v17 = vadd.f32 %v1829_v15, %v1826_v14  ;;  %v1836_v18 = vld [vmem:[%s1785_s5 + $0x120] sm:$0xff]  ;;  %v1839_v19 = vld [vmem:[%s1785_s5 + $0x128] sm:$0xff]  ;;  %v1842_v20 = vld [vmem:[%s1785_s5 + $0x130] sm:$0xff] }
  0x20   : > { %v1845_v21 = vld [vmem:[%s1785_s5 + $0x138] sm:$0xff]  ;;  %v321_v22 = vadd.f32 %v1839_v19, %v1836_v18  ;;  %v1852_v24 = vld [vmem:[%s1785_s5 + $0x40] sm:$0xff]  ;;  %v1855_v25 = vld [vmem:[%s1785_s5 + $0x48] sm:$0xff]  ;;  %p1644_p13 = pneg %p1643_p12  ;;  %p1650_p2 = por %p1649_p1, %p1648_p0 }
  0x21   : > { %v324_v23 = vadd.f32 %v1845_v21, %v1842_v20  ;;  %v1858_v26 = vld [vmem:[%s1785_s5 + $0x50] sm:$0xff]  ;;  %v1861_v27 = vld [vmem:[%s1785_s5 + $0x58] sm:$0xff]  ;;  %v279_v28 = vadd.f32 %v1855_v25, %v1852_v24  ;;  %v1868_v30 = vld [vmem:[%s1785_s5 + $0x140] sm:$0xff] }
  0x22   : > { %271 = vadd.xlane.f32.xlu0 %v270_v10  ;;  %v282_v29 = vadd.f32 %v1861_v27, %v1858_v26  ;;  %v1871_v31 = vld [vmem:[%s1785_s5 + $0x148] sm:$0xff]  ;;  %v1874_v32 = vld [vmem:[%s1785_s5 + $0x150] sm:$0xff]  ;;  %v1877_v33 = vld [vmem:[%s1785_s5 + $0x158] sm:$0xff]  ;;  %p1651_p3 = pnand %p1650_p2, %p1644_p13 }
  0x23   : > { %319 = vadd.xlane.f32.xlu1 %v318_v11  ;;  %v327_v34 = vadd.f32 %v1871_v31, %v1868_v30  ;;  %v330_v35 = vadd.f32 %v1877_v33, %v1874_v32  ;;  %v1884_v36 = vld [vmem:[%s1785_s5 + $0x60] sm:$0xff]  ;;  %v1887_v37 = vld [vmem:[%s1785_s5 + $0x68] sm:$0xff]  ;;  %v1890_v38 = vld [vmem:[%s1785_s5 + $0x70] sm:$0xff] }
  0x24   : > { %v1893_v39 = vld [vmem:[%s1785_s5 + $0x78] sm:$0xff]  ;;  %v1896_v40 = vld [vmem:[%s1785_s5 + $0x160] sm:$0xff]  ;;  %v1899_v41 = vld [vmem:[%s1785_s5 + $0x168] sm:$0xff]  ;;  %v285_v42 = vadd.f32 %v1887_v37, %v1884_v36 }
  0x25   : > { %v1904_v43 = vld [vmem:[%s1785_s5 + $0x170] sm:$0xff]  ;;  %v1907_v44 = vld [vmem:[%s1785_s5 + $0x178] sm:$0xff]  ;;  %v288_v45 = vadd.f32 %v1893_v39, %v1890_v38  ;;  %v333_v46 = vadd.f32 %v1899_v41, %v1896_v40  ;;  %v1916_v48 = vld [vmem:[%s1785_s5 + $0x80] sm:$0xff] }
  0x26   : > { %274 = vadd.xlane.f32.xlu0 %v273_v16  ;;  %v336_v47 = vadd.f32 %v1907_v44, %v1904_v43  ;;  %v1919_v49 = vld [vmem:[%s1785_s5 + $0x88] sm:$0xff]  ;;  %v1922_v50 = vld [vmem:[%s1785_s5 + $0x90] sm:$0xff]  ;;  %v1925_v51 = vld [vmem:[%s1785_s5 + $0x98] sm:$0xff] }
  0x27   : > { %277 = vadd.xlane.f32.xlu1 %v276_v17  ;;  %v291_v52 = vadd.f32 %v1919_v49, %v1916_v48  ;;  %v294_v53 = vadd.f32 %v1925_v51, %v1922_v50  ;;  %v1932_v54 = vld [vmem:[%s1785_s5 + $0x180] sm:$0xff]  ;;  %v1935_v55 = vld [vmem:[%s1785_s5 + $0x188] sm:$0xff]  ;;  %v1938_v56 = vld [vmem:[%s1785_s5 + $0x190] sm:$0xff] }
  0x28   : > { %v1941_v57 = vld [vmem:[%s1785_s5 + $0x198] sm:$0xff]  ;;  %v339_v58 = vadd.f32 %v1935_v55, %v1932_v54  ;;  %v1948_v60 = vld [vmem:[%s1785_s5 + $0xa0] sm:$0xff]  ;;  %v1951_v61 = vld [vmem:[%s1785_s5 + $0xa8] sm:$0xff] }
  0x29   : > { %v342_v59 = vadd.f32 %v1941_v57, %v1938_v56  ;;  %v1954_v62 = vld [vmem:[%s1785_s5 + $0xb0] sm:$0xff]  ;;  %v1957_v63 = vld [vmem:[%s1785_s5 + $0xb8] sm:$0xff]  ;;  %v297_v3 = vadd.f32 %v1951_v61, %v1948_v60  ;;  %v1964_v10 = vld [vmem:[%s1785_s5 + $0x1a0] sm:$0xff] }
  0x2a   : > { %322 = vadd.xlane.f32.xlu0 %v321_v22  ;;  %v300_v7 = vadd.f32 %v1957_v63, %v1954_v62  ;;  %v1967_v11 = vld [vmem:[%s1785_s5 + $0x1a8] sm:$0xff]  ;;  %v1970_v16 = vld [vmem:[%s1785_s5 + $0x1b0] sm:$0xff]  ;;  %v1973_v17 = vld [vmem:[%s1785_s5 + $0x1b8] sm:$0xff] }
  0x2b   : > { %325 = vadd.xlane.f32.xlu1 %v324_v23  ;;  %v345_v22 = vadd.f32 %v1967_v11, %v1964_v10  ;;  %v348_v23 = vadd.f32 %v1973_v17, %v1970_v16 }
  0x2e   : > { %280 = vadd.xlane.f32.xlu0 %v279_v28  ;;  %v1980_v28 = vld [vmem:[%s1785_s5 + $0xc0] sm:$0xff] }
  0x2f   : > { %283 = vadd.xlane.f32.xlu1 %v282_v29  ;;  %v1983_v29 = vld [vmem:[%s1785_s5 + $0xc8] sm:$0xff] }
  0x32   : > { %328 = vadd.xlane.f32.xlu0 %v327_v34  ;;  %v1986_v34 = vld [vmem:[%s1785_s5 + $0xd0] sm:$0xff] }
  0x33   : > { %331 = vadd.xlane.f32.xlu1 %v330_v35  ;;  %v1989_v35 = vld [vmem:[%s1785_s5 + $0xd8] sm:$0xff] }
  0x34   : > { %2816 = vst [vmem:[#allocation5_spill] sm:$0xff] %v1989_v35 }
  0x36   : > { %286 = vadd.xlane.f32.xlu0 %v285_v42  ;;  %v303_v42 = vadd.f32 %v1983_v29, %v1980_v28 }
  0x37   : > { %289 = vadd.xlane.f32.xlu1 %v288_v45  ;;  %v306_v45 = vadd.f32 %v1989_v35, %v1986_v34 }
  0x3a   : > { %334 = vadd.xlane.f32.xlu0 %v333_v46  ;;  %v1996_v46 = vld [vmem:[%s1785_s5 + $0x1c0] sm:$0xff] }
  0x3b   : > { %337 = vadd.xlane.f32.xlu1 %v336_v47  ;;  %2817 = vst [vmem:[#allocation6_spill] sm:$0xff] %v1996_v46  ;;  %v1999_v47 = vld [vmem:[%s1785_s5 + $0x1c8] sm:$0xff] }
  0x3c   : > { %2818 = vst [vmem:[#allocation7_spill] sm:$0xff] %v1999_v47 }
  0x3e   : > { %292 = vadd.xlane.f32.xlu0 %v291_v52  ;;  %v2002_v52 = vld [vmem:[%s1785_s5 + $0x1d0] sm:$0xff] }
  0x3f   : > { %295 = vadd.xlane.f32.xlu1 %v294_v53  ;;  %2819 = vst [vmem:[#allocation8_spill] sm:$0xff] %v2002_v52  ;;  %v2005_v53 = vld [vmem:[%s1785_s5 + $0x1d8] sm:$0xff] }
  0x40   : > { %2820 = vst [vmem:[#allocation9_spill] sm:$0xff] %v2005_v53 }
  0x42   : > { %340 = vadd.xlane.f32.xlu0 %v339_v58  ;;  %v351_v58 = vadd.f32 %v1999_v47, %v1996_v46  ;;  %v2031_v47 = vld [vmem:[%s1785_s5 + $0x1e8] sm:$0xff] }
  0x43   : > { %343 = vadd.xlane.f32.xlu1 %v342_v59  ;;  %v354_v59 = vadd.f32 %v2005_v53, %v2002_v52  ;;  %2825 = vst [vmem:[#allocation14_spill] sm:$0xff] %v2031_v47  ;;  %v2034_v53 = vld [vmem:[%s1785_s5 + $0x1f0] sm:$0xff]  ;;  %v2037_v52 = vld [vmem:[%s1785_s5 + $0x1f8] sm:$0xff] }
  0x44   : > { %2826 = vst [vmem:[#allocation15_spill] sm:$0xff] %v2034_v53  ;;  %2827 = vst [vmem:[#allocation16_spill] sm:$0xff] %v2037_v52 }
  0x46   : > { %298 = vadd.xlane.f32.xlu0 %v297_v3  ;;  %v2012_v3 = vld [vmem:[%s1785_s5 + $0xe0] sm:$0xff] }
  0x47   : > { %301 = vadd.xlane.f32.xlu1 %v300_v7  ;;  %v2015_v7 = vld [vmem:[%s1785_s5 + $0xe8] sm:$0xff] }
  0x48   : > { %2821 = vst [vmem:[#allocation10_spill] sm:$0xff] %v2015_v7  ;;  %v309_v35 = vadd.f32 %v2015_v7, %v2012_v3 }
  0x4a   : > { %346 = vadd.xlane.f32.xlu0 %v345_v22  ;;  %v2018_v22 = vld [vmem:[%s1785_s5 + $0xf0] sm:$0xff] }
  0x4b   : > { %349 = vadd.xlane.f32.xlu1 %v348_v23  ;;  %2822 = vst [vmem:[#allocation11_spill] sm:$0xff] %v2018_v22  ;;  %v2021_v23 = vld [vmem:[%s1785_s5 + $0xf8] sm:$0xff] }
  0x4c   : > { %2823 = vst [vmem:[#allocation12_spill] sm:$0xff] %v2021_v23 }
  0x4e   : > { %304 = vadd.xlane.f32.xlu0 %v303_v42  ;;  %v312_v42 = vadd.f32 %v2021_v23, %v2018_v22  ;;  %v1562_v23 = vld [vmem:[%s2773_s3] sm:$0xff]  }
  0x4f   : > { %307 = vadd.xlane.f32.xlu1 %v306_v45  ;;  %v2028_v45 = vld [vmem:[%s1785_s5 + $0x1e0] sm:$0xff] }
  0x50   : > { %2824 = vst [vmem:[#allocation13_spill] sm:$0xff] %v2028_v45  ;;  %v357_v46 = vadd.f32 %v2031_v47, %v2028_v45 }
  0x52   : > { %352 = vadd.xlane.f32.xlu0 %v351_v58  ;;  %v360_v58 = vadd.f32 %v2037_v52, %v2034_v53 }
  0x53   : > { %355 = vadd.xlane.f32.xlu1 %v354_v59  ;;  %v1561_v59 = vld [vmem:[%s2773_s3 + $0x40] sm:$0xff]  }
  0x54   : > { %1392 = vmatprep.subr.bf16.mxu0 %v1561_v59  ;;  %1504 = vmatprep.subr.bf16.mxu1 %v1561_v59 }
  0x55   : > { %1393 = vmatpush3.bf16.msra.mxu0 %v1562_v23  ;;  %1512 = vmatpush3.bf16.msra.mxu1 %v1562_v23 }
  0x56   : > { %310 = vadd.xlane.f32.xlu0 %v309_v35 }
  0x57   : > { %313 = vadd.xlane.f32.xlu1 %v312_v42 }
  0x5a   : > { %358 = vadd.xlane.f32.xlu0 %v357_v46 }
  0x5b   : > { %361 = vadd.xlane.f32.xlu1 %v360_v58 }
  0xab   : > { %v269_v35 = vpop.xlane.xlu0 %268 }
  0xac   : > { %v364_v47 = vmul.f32 0.00390625, %v269_v35  ;;  %v317_v42 = vpop.xlane.xlu1 %316 }
  0xad   : > { %v380_v45 = vmul.f32 0.00390625, %v317_v42 }
  0xae   : > { %v2050_v52 = vsub.f32 %v1788_v0, %v364_v47  ;;  %v2053_v46 = vsub.f32 %v1791_v1, %v364_v47 }
  0xaf   : > { %v2056_v58 = vsub.f32 %v1794_v2, %v380_v45  ;;  %v2059_v53 = vsub.f32 %v1799_v4, %v380_v45  ;;  %v272_v22 = vpop.xlane.xlu0 %271 }
  0xb0   : > { %2828 = vst [vmem:[#allocation17_spill] sm:$0xff] %v2050_v52  ;;  %2829 = vst [vmem:[#allocation18_spill] sm:$0xff] %v2053_v46  ;;  %v365_v59 = vmul.f32 0.00390625, %v272_v22  ;;  %v320_v7 = vpop.xlane.xlu1 %319  ;;  %v460_v23 = vmul.f32 %v2050_v52, %v2050_v52  ;;  %v461_v35 = vmul.f32 %v2053_v46, %v2053_v46 }
  0xb1   : > { %2830 = vst [vmem:[#allocation19_spill] sm:$0xff] %v2056_v58  ;;  %2831 = vst [vmem:[#allocation20_spill] sm:$0xff] %v2059_v53  ;;  %v381_v0 = vmul.f32 0.00390625, %v320_v7  ;;  %v492_v1 = vmul.f32 %v2056_v58, %v2056_v58  ;;  %v493_v2 = vmul.f32 %v2059_v53, %v2059_v53 }
  0xb2   : > { %v2070_v47 = vsub.f32 %v1802_v5, %v365_v59  ;;  %v2073_v4 = vsub.f32 %v1805_v6, %v365_v59  ;;  %v524_v22 = vadd.f32 %v461_v35, %v460_v23 }
  0xb3   : > { %v2076_v45 = vsub.f32 %v1810_v8, %v381_v0  ;;  %v2079_v42 = vsub.f32 %v1813_v9, %v381_v0  ;;  %v275_v7 = vpop.xlane.xlu0 %274  ;;  %v572_v46 = vadd.f32 %v493_v2, %v492_v1 }
  0xb4   : > { %v366_v52 = vmul.f32 0.00390625, %v275_v7  ;;  %525 = vadd.xlane.f32.xlu0 %v524_v22  ;;  %v278_v58 = vpop.xlane.xlu1 %277  ;;  %v462_v53 = vmul.f32 %v2070_v47, %v2070_v47  ;;  %v463_v5 = vmul.f32 %v2073_v4, %v2073_v4 }
  0xb5   : > { %v367_v6 = vmul.f32 0.00390625, %v278_v58  ;;  %v494_v59 = vmul.f32 %v2076_v45, %v2076_v45  ;;  %v495_v8 = vmul.f32 %v2079_v42, %v2079_v42 }
  0xb6   : > { %v2090_v9 = vsub.f32 %v1820_v12, %v366_v52  ;;  %v2093_v23 = vsub.f32 %v1823_v13, %v366_v52  ;;  %v527_v35 = vadd.f32 %v463_v5, %v462_v53 }
  0xb7   : > { %v2096_v0 = vsub.f32 %v1826_v14, %v367_v6  ;;  %v2099_v1 = vsub.f32 %v1829_v15, %v367_v6  ;;  %v323_v58 = vpop.xlane.xlu0 %322  ;;  %v575_v7 = vadd.f32 %v495_v8, %v494_v59 }
  0xb8   : > { %v382_v2 = vmul.f32 0.00390625, %v323_v58  ;;  %573 = vadd.xlane.f32.xlu0 %v572_v46  ;;  %528 = vadd.xlane.f32.xlu1 %v527_v35  ;;  %v326_v22 = vpop.xlane.xlu1 %325  ;;  %v464_v12 = vmul.f32 %v2090_v9, %v2090_v9  ;;  %v465_v13 = vmul.f32 %v2093_v23, %v2093_v23 }
  0xb9   : > { %v383_v52 = vmul.f32 0.00390625, %v326_v22  ;;  %v466_v14 = vmul.f32 %v2096_v0, %v2096_v0  ;;  %v467_v15 = vmul.f32 %v2099_v1, %v2099_v1 }
  0xba   : > { %v2110_v53 = vsub.f32 %v1836_v18, %v382_v2  ;;  %v2113_v46 = vsub.f32 %v1839_v19, %v382_v2  ;;  %v530_v5 = vadd.f32 %v465_v13, %v464_v12 }
  0xbb   : > { %v2116_v6 = vsub.f32 %v1842_v20, %v383_v52  ;;  %v2119_v59 = vsub.f32 %v1845_v21, %v383_v52  ;;  %v281_v8 = vpop.xlane.xlu0 %280  ;;  %v533_v22 = vadd.f32 %v467_v15, %v466_v14 }
  0xbc   : > { %v368_v35 = vmul.f32 0.00390625, %v281_v8  ;;  %576 = vadd.xlane.f32.xlu1 %v575_v7  ;;  %531 = vadd.xlane.f32.xlu0 %v530_v5  ;;  %v284_v58 = vpop.xlane.xlu1 %283  ;;  %v496_v18 = vmul.f32 %v2110_v53, %v2110_v53  ;;  %v497_v19 = vmul.f32 %v2113_v46, %v2113_v46 }
  0xbd   : > { %v369_v2 = vmul.f32 0.00390625, %v284_v58  ;;  %v498_v20 = vmul.f32 %v2116_v6, %v2116_v6  ;;  %v499_v21 = vmul.f32 %v2119_v59, %v2119_v59 }
  0xbe   : > { %v2130_v12 = vsub.f32 %v1852_v24, %v368_v35  ;;  %v2133_v7 = vsub.f32 %v1855_v25, %v368_v35  ;;  %v578_v13 = vadd.f32 %v497_v19, %v496_v18  ;;  %v1564_v18 = vld [vmem:[%s2773_s3 + $0x8] sm:$0xff]  }
  0xbf   : > { %v2136_v52 = vsub.f32 %v1858_v26, %v369_v2  ;;  %v2139_v14 = vsub.f32 %v1861_v27, %v369_v2  ;;  %v329_v15 = vpop.xlane.xlu0 %328  ;;  %v581_v58 = vadd.f32 %v499_v21, %v498_v20  ;;  %v1563_v26 = vld [vmem:[%s2773_s3 + $0x48] sm:$0xff]  }
  0xc0   : > { %v384_v5 = vmul.f32 0.00390625, %v329_v15  ;;  %534 = vadd.xlane.f32.xlu1 %v533_v22  ;;  %579 = vadd.xlane.f32.xlu0 %v578_v13  ;;  %v332_v8 = vpop.xlane.xlu1 %331  ;;  %v468_v24 = vmul.f32 %v2130_v12, %v2130_v12  ;;  %v469_v25 = vmul.f32 %v2133_v7, %v2133_v7 }
  0xc1   : > { %2832 = vst [vmem:[#allocation21_spill] sm:$0xff] %v2136_v52  ;;  %v385_v35 = vmul.f32 0.00390625, %v332_v8  ;;  %v470_v27 = vmul.f32 %v2136_v52, %v2136_v52  ;;  %v471_v22 = vmul.f32 %v2139_v14, %v2139_v14  ;;  %1394 = vmatprep.subr.bf16.mxu0 %v1563_v26  ;;  %1505 = vmatprep.subr.bf16.mxu1 %v1563_v26 }
  0xc2   : > { %v2156_v19 = vsub.f32 %v1868_v30, %v384_v5  ;;  %v2159_v2 = vsub.f32 %v1871_v31, %v384_v5  ;;  %v536_v20 = vadd.f32 %v469_v25, %v468_v24  ;;  %1395 = vmatpush3.bf16.msra.mxu0 %v1564_v18  ;;  %1513 = vmatpush3.bf16.msra.mxu1 %v1564_v18 }
  0xc3   : > { %v2162_v21 = vsub.f32 %v1874_v32, %v385_v35  ;;  %v2165_v13 = vsub.f32 %v1877_v33, %v385_v35  ;;  %v287_v15 = vpop.xlane.xlu0 %286  ;;  %v539_v52 = vadd.f32 %v471_v22, %v470_v27  ;;  %v1566_v27 = vld [vmem:[%s2773_s3 + $0x10] sm:$0xff]  }
  0xc4   : > { %v370_v8 = vmul.f32 0.00390625, %v287_v15  ;;  %582 = vadd.xlane.f32.xlu1 %v581_v58  ;;  %537 = vadd.xlane.f32.xlu0 %v536_v20  ;;  %v290_v30 = vpop.xlane.xlu1 %289  ;;  %v500_v31 = vmul.f32 %v2156_v19, %v2156_v19  ;;  %v501_v5 = vmul.f32 %v2159_v2, %v2159_v2  ;;  %v1565_v58 = vld [vmem:[%s2773_s3 + $0x50] sm:$0xff]  }
  0xc5   : > { %v371_v24 = vmul.f32 0.00390625, %v290_v30  ;;  %v502_v32 = vmul.f32 %v2162_v21, %v2162_v21  ;;  %v503_v33 = vmul.f32 %v2165_v13, %v2165_v13  ;;  %1396 = vmatprep.subr.bf16.mxu0 %v1565_v58  ;;  %1506 = vmatprep.subr.bf16.mxu1 %v1565_v58 }
  0xc6   : > { %v2179_v25 = vsub.f32 %v1884_v36, %v370_v8  ;;  %v2182_v26 = vsub.f32 %v1887_v37, %v370_v8  ;;  %v584_v35 = vadd.f32 %v501_v5, %v500_v31  ;;  %1397 = vmatpush3.bf16.msra.mxu0 %v1566_v27  ;;  %1514 = vmatpush3.bf16.msra.mxu1 %v1566_v27 }
  0xc7   : > { %v2188_v22 = vsub.f32 %v1890_v38, %v371_v24  ;;  %v2191_v18 = vsub.f32 %v1893_v39, %v371_v24  ;;  %v335_v20 = vpop.xlane.xlu0 %334  ;;  %v587_v37 = vadd.f32 %v503_v33, %v502_v32  ;;  %v1568_v33 = vld [vmem:[%s2773_s3 + $0x18] sm:$0xff]  }
  0xc8   : > { %v386_v15 = vmul.f32 0.00390625, %v335_v20  ;;  %540 = vadd.xlane.f32.xlu1 %v539_v52  ;;  %585 = vadd.xlane.f32.xlu0 %v584_v35  ;;  %v338_v36 = vpop.xlane.xlu1 %337  ;;  %v472_v8 = vmul.f32 %v2179_v25, %v2179_v25  ;;  %v473_v30 = vmul.f32 %v2182_v26, %v2182_v26  ;;  %v1567_v52 = vld [vmem:[%s2773_s3 + $0x58] sm:$0xff]  }
  0xc9   : > { %v387_v31 = vmul.f32 0.00390625, %v338_v36  ;;  %v474_v38 = vmul.f32 %v2188_v22, %v2188_v22  ;;  %v475_v39 = vmul.f32 %v2191_v18, %v2191_v18  ;;  %1398 = vmatprep.subr.bf16.mxu0 %v1567_v52  ;;  %1507 = vmatprep.subr.bf16.mxu1 %v1567_v52 }
  0xca   : > { %v2205_v5 = vsub.f32 %v1896_v40, %v386_v15  ;;  %v2208_v24 = vsub.f32 %v1899_v41, %v386_v15  ;;  %v542_v32 = vadd.f32 %v473_v30, %v472_v8  ;;  %1399 = vmatpush3.bf16.msra.mxu0 %v1568_v33  ;;  %1515 = vmatpush3.bf16.msra.mxu1 %v1568_v33 }
  0xcb   : > { %v2214_v58 = vsub.f32 %v1904_v43, %v387_v31  ;;  %v2217_v35 = vsub.f32 %v1907_v44, %v387_v31  ;;  %v293_v20 = vpop.xlane.xlu0 %292  ;;  %v545_v41 = vadd.f32 %v475_v39, %v474_v38  ;;  %v1570_v39 = vld [vmem:[%s2773_s3 + $0x20] sm:$0xff]  }
  0xcc   : > { %v372_v27 = vmul.f32 0.00390625, %v293_v20  ;;  %588 = vadd.xlane.f32.xlu1 %v587_v37  ;;  %543 = vadd.xlane.f32.xlu0 %v542_v32  ;;  %v296_v40 = vpop.xlane.xlu1 %295  ;;  %v504_v15 = vmul.f32 %v2205_v5, %v2205_v5  ;;  %v505_v36 = vmul.f32 %v2208_v24, %v2208_v24  ;;  %v1569_v37 = vld [vmem:[%s2773_s3 + $0x60] sm:$0xff]  }
  0xcd   : > { %v373_v8 = vmul.f32 0.00390625, %v296_v40  ;;  %v506_v43 = vmul.f32 %v2214_v58, %v2214_v58  ;;  %v507_v44 = vmul.f32 %v2217_v35, %v2217_v35  ;;  %1400 = vmatprep.subr.bf16.mxu0 %v1569_v37  ;;  %1508 = vmatprep.subr.bf16.mxu1 %v1569_v37 }
  0xce   : > { %v2231_v30 = vsub.f32 %v1916_v48, %v372_v27  ;;  %v2234_v31 = vsub.f32 %v1919_v49, %v372_v27  ;;  %v590_v38 = vadd.f32 %v505_v36, %v504_v15  ;;  %1401 = vmatpush3.bf16.msra.mxu0 %v1570_v39  ;;  %1516 = vmatpush3.bf16.msra.mxu1 %v1570_v39 }
  0xcf   : > { %v2240_v52 = vsub.f32 %v1922_v50, %v373_v8  ;;  %v2243_v32 = vsub.f32 %v1925_v51, %v373_v8  ;;  %v341_v20 = vpop.xlane.xlu0 %340  ;;  %v593_v49 = vadd.f32 %v507_v44, %v506_v43  ;;  %v1572_v44 = vld [vmem:[%s2773_s3 + $0x28] sm:$0xff]  }
  0xd0   : > { %v388_v33 = vmul.f32 0.00390625, %v341_v20  ;;  %546 = vadd.xlane.f32.xlu1 %v545_v41  ;;  %591 = vadd.xlane.f32.xlu0 %v590_v38  ;;  %v344_v48 = vpop.xlane.xlu1 %343  ;;  %v476_v27 = vmul.f32 %v2231_v30, %v2231_v30  ;;  %v477_v40 = vmul.f32 %v2234_v31, %v2234_v31  ;;  %v1571_v41 = vld [vmem:[%s2773_s3 + $0x68] sm:$0xff]  }
  0xd1   : > { %v389_v15 = vmul.f32 0.00390625, %v344_v48  ;;  %v478_v50 = vmul.f32 %v2240_v52, %v2240_v52  ;;  %v479_v51 = vmul.f32 %v2243_v32, %v2243_v32  ;;  %1402 = vmatprep.subr.bf16.mxu0 %v1571_v41  ;;  %1509 = vmatprep.subr.bf16.mxu1 %v1571_v41 }
  0xd2   : > { %v2257_v36 = vsub.f32 %v1932_v54, %v388_v33  ;;  %v2260_v8 = vsub.f32 %v1935_v55, %v388_v33  ;;  %v548_v43 = vadd.f32 %v477_v40, %v476_v27  ;;  %1403 = vmatpush3.bf16.msra.mxu0 %v1572_v44  ;;  %1517 = vmatpush3.bf16.msra.mxu1 %v1572_v44 }
  0xd3   : > { %v2266_v37 = vsub.f32 %v1938_v56, %v389_v15  ;;  %v2269_v38 = vsub.f32 %v1941_v57, %v389_v15  ;;  %v299_v20 = vpop.xlane.xlu0 %298  ;;  %v551_v55 = vadd.f32 %v479_v51, %v478_v50  ;;  %v1574_v51 = vld [vmem:[%s2773_s3 + $0x30] sm:$0xff]  }
  0xd4   : > { %v374_v39 = vmul.f32 0.00390625, %v299_v20  ;;  %594 = vadd.xlane.f32.xlu1 %v593_v49  ;;  %549 = vadd.xlane.f32.xlu0 %v548_v43  ;;  %v302_v54 = vpop.xlane.xlu1 %301  ;;  %v508_v33 = vmul.f32 %v2257_v36, %v2257_v36  ;;  %v509_v48 = vmul.f32 %v2260_v8, %v2260_v8  ;;  %v1573_v49 = vld [vmem:[%s2773_s3 + $0x70] sm:$0xff]  }
  0xd5   : > { %v375_v27 = vmul.f32 0.00390625, %v302_v54  ;;  %v510_v56 = vmul.f32 %v2266_v37, %v2266_v37  ;;  %v511_v57 = vmul.f32 %v2269_v38, %v2269_v38  ;;  %1404 = vmatprep.subr.bf16.mxu0 %v1573_v49  ;;  %1510 = vmatprep.subr.bf16.mxu1 %v1573_v49 }
  0xd6   : > { %v2283_v40 = vsub.f32 %v1948_v60, %v374_v39  ;;  %v2286_v15 = vsub.f32 %v1951_v61, %v374_v39  ;;  %v596_v50 = vadd.f32 %v509_v48, %v508_v33  ;;  %1405 = vmatpush3.bf16.msra.mxu0 %v1574_v51  ;;  %1518 = vmatpush3.bf16.msra.mxu1 %v1574_v51 }
  0xd7   : > { %v2292_v41 = vsub.f32 %v1954_v62, %v375_v27  ;;  %v2295_v43 = vsub.f32 %v1957_v63, %v375_v27  ;;  %v347_v20 = vpop.xlane.xlu0 %346  ;;  %v599_v61 = vadd.f32 %v511_v57, %v510_v56  ;;  %v1576_v57 = vld [vmem:[%s2773_s3 + $0x38] sm:$0xff]  }
  0xd8   : > { %2833 = vst [vmem:[#allocation22_spill] sm:$0xff] %v2283_v40  ;;  %v390_v44 = vmul.f32 0.00390625, %v347_v20  ;;  %552 = vadd.xlane.f32.xlu1 %v551_v55  ;;  %597 = vadd.xlane.f32.xlu0 %v596_v50  ;;  %v350_v60 = vpop.xlane.xlu1 %349  ;;  %v480_v39 = vmul.f32 %v2283_v40, %v2283_v40  ;;  %v481_v54 = vmul.f32 %v2286_v15, %v2286_v15  ;;  %v1575_v55 = vld [vmem:[%s2773_s3 + $0x78] sm:$0xff]  }
  0xd9   : > { %2834 = vst [vmem:[#allocation23_spill] sm:$0xff] %v2292_v41  ;;  %v391_v33 = vmul.f32 0.00390625, %v350_v60  ;;  %v482_v62 = vmul.f32 %v2292_v41, %v2292_v41  ;;  %v483_v63 = vmul.f32 %v2295_v43, %v2295_v43  ;;  %1406 = vmatprep.subr.bf16.mxu0 %v1575_v55  ;;  %1511 = vmatprep.subr.bf16.mxu1 %v1575_v55 }
  0xda   : > { %v2309_v48 = vsub.f32 %v1964_v10, %v390_v44  ;;  %v2312_v27 = vsub.f32 %v1967_v11, %v390_v44  ;;  %v554_v56 = vadd.f32 %v481_v54, %v480_v39  ;;  %1407 = vmatpush3.bf16.msra.mxu0 %v1576_v57  ;;  %1519 = vmatpush3.bf16.msra.mxu1 %v1576_v57 }
  0xdb   : > { %v2318_v49 = vsub.f32 %v1970_v16, %v391_v33  ;;  %v2321_v50 = vsub.f32 %v1973_v17, %v391_v33  ;;  %v305_v20 = vpop.xlane.xlu0 %304  ;;  %v557_v11 = vadd.f32 %v483_v63, %v482_v62  ;;  %v2842_v63 = vld [vmem:[#allocation5_spill] sm:$0xff] }
  0xdc   : > { %2835 = vst [vmem:[#allocation24_spill] sm:$0xff] %v2309_v48  ;;  %2836 = vst [vmem:[#allocation25_spill] sm:$0xff] %v2312_v27  ;;  %v376_v51 = vmul.f32 0.00390625, %v305_v20  ;;  %600 = vadd.xlane.f32.xlu1 %v599_v61  ;;  %555 = vadd.xlane.f32.xlu0 %v554_v56  ;;  %v308_v10 = vpop.xlane.xlu1 %307  ;;  %v512_v44 = vmul.f32 %v2309_v48, %v2309_v48  ;;  %v513_v60 = vmul.f32 %v2312_v27, %v2312_v27 }
  0xdd   : > { %2837 = vst [vmem:[#allocation26_spill] sm:$0xff] %v2318_v49  ;;  %2838 = vst [vmem:[#allocation27_spill] sm:$0xff] %v2321_v50  ;;  %v377_v39 = vmul.f32 0.00390625, %v308_v10  ;;  %v514_v16 = vmul.f32 %v2318_v49, %v2318_v49  ;;  %v515_v17 = vmul.f32 %v2321_v50, %v2321_v50 }
  0xde   : > { %v2332_v61 = vsub.f32 %v1980_v28, %v376_v51  ;;  %v2335_v54 = vsub.f32 %v1983_v29, %v376_v51  ;;  %v602_v33 = vadd.f32 %v513_v60, %v512_v44  ;;  %v2844_v44 = vld [vmem:[#allocation6_spill] sm:$0xff] }
  0xdf   : > { %v2338_v62 = vsub.f32 %v1986_v34, %v377_v39  ;;  %v2341_v55 = vsub.f32 %v2842_v63, %v377_v39  ;;  %v353_v56 = vpop.xlane.xlu0 %352  ;;  %v605_v49 = vadd.f32 %v515_v17, %v514_v16  ;;  %v2848_v17 = vld [vmem:[#allocation8_spill] sm:$0xff]  ;;  %v2850_v63 = vld [vmem:[#allocation9_spill] sm:$0xff] }
  0xe0   : > { %2839 = vst [vmem:[#allocation28_spill] sm:$0xff] %v2332_v61  ;;  %2840 = vst [vmem:[#allocation29_spill] sm:$0xff] %v2335_v54  ;;  %v392_v20 = vmul.f32 0.00390625, %v353_v56  ;;  %558 = vadd.xlane.f32.xlu1 %v557_v11  ;;  %603 = vadd.xlane.f32.xlu0 %v602_v33  ;;  %v356_v10 = vpop.xlane.xlu1 %355  ;;  %v484_v28 = vmul.f32 %v2332_v61, %v2332_v61  ;;  %v485_v29 = vmul.f32 %v2335_v54, %v2335_v54  ;;  %v2846_v11 = vld [vmem:[#allocation7_spill] sm:$0xff] }
  0xe1   : > { %2841 = vst [vmem:[#allocation30_spill] sm:$0xff] %v2338_v62  ;;  %2843 = vst [vmem:[#allocation5_spill] sm:$0xff] %v2341_v55  ;;  %v393_v57 = vmul.f32 0.00390625, %v356_v10  ;;  %v486_v34 = vmul.f32 %v2338_v62, %v2338_v62  ;;  %v487_v51 = vmul.f32 %v2341_v55, %v2341_v55 }
  0xe2   : > { %v2352_v60 = vsub.f32 %v2844_v44, %v392_v20  ;;  %v2355_v39 = vsub.f32 %v2846_v11, %v392_v20  ;;  %v560_v16 = vadd.f32 %v485_v29, %v484_v28 }
  0xe3   : > { %v2358_v33 = vsub.f32 %v2848_v17, %v393_v57  ;;  %v2361_v56 = vsub.f32 %v2850_v63, %v393_v57  ;;  %v311_v10 = vpop.xlane.xlu0 %310  ;;  %v563_v54 = vadd.f32 %v487_v51, %v486_v34  ;;  %v2855_v51 = vld [vmem:[#allocation11_spill] sm:$0xff]  ;;  %v2857_v63 = vld [vmem:[#allocation12_spill] sm:$0xff] }
  0xe4   : > { %2845 = vst [vmem:[#allocation6_spill] sm:$0xff] %v2352_v60  ;;  %2847 = vst [vmem:[#allocation7_spill] sm:$0xff] %v2355_v39  ;;  %v378_v61 = vmul.f32 0.00390625, %v311_v10  ;;  %606 = vadd.xlane.f32.xlu1 %v605_v49  ;;  %561 = vadd.xlane.f32.xlu0 %v560_v16  ;;  %v314_v62 = vpop.xlane.xlu1 %313  ;;  %v516_v44 = vmul.f32 %v2352_v60, %v2352_v60  ;;  %v517_v20 = vmul.f32 %v2355_v39, %v2355_v39  ;;  %v2853_v49 = vld [vmem:[#allocation10_spill] sm:$0xff] }
  0xe5   : > { %2849 = vst [vmem:[#allocation8_spill] sm:$0xff] %v2358_v33  ;;  %2851 = vst [vmem:[#allocation9_spill] sm:$0xff] %v2361_v56  ;;  %v379_v11 = vmul.f32 0.00390625, %v314_v62  ;;  %v518_v28 = vmul.f32 %v2358_v33, %v2358_v33  ;;  %v519_v29 = vmul.f32 %v2361_v56, %v2361_v56 }
  0xe6   : > { %v2372_v57 = vsub.f32 %v2012_v3, %v378_v61  ;;  %v2375_v16 = vsub.f32 %v2853_v49, %v378_v61  ;;  %v608_v34 = vadd.f32 %v517_v20, %v516_v44 }
  0xe7   : > { %v2378_v17 = vsub.f32 %v2855_v51, %v379_v11  ;;  %v2381_v10 = vsub.f32 %v2857_v63, %v379_v11  ;;  %v359_v62 = vpop.xlane.xlu0 %358  ;;  %v611_v39 = vadd.f32 %v519_v29, %v518_v28  ;;  %v2859_v11 = vld [vmem:[#allocation13_spill] sm:$0xff]  ;;  %v2863_v29 = vld [vmem:[#allocation15_spill] sm:$0xff] }
  0xe8   : > { %2852 = vst [vmem:[#allocation31_spill] sm:$0xff] %v2372_v57  ;;  %2854 = vst [vmem:[#allocation10_spill] sm:$0xff] %v2375_v16  ;;  %v394_v60 = vmul.f32 0.00390625, %v359_v62  ;;  %564 = vadd.xlane.f32.xlu1 %v563_v54  ;;  %609 = vadd.xlane.f32.xlu0 %v608_v34  ;;  %v362_v33 = vpop.xlane.xlu1 %361  ;;  %v488_v3 = vmul.f32 %v2372_v57, %v2372_v57  ;;  %v489_v61 = vmul.f32 %v2375_v16, %v2375_v16  ;;  %v2861_v54 = vld [vmem:[#allocation14_spill] sm:$0xff]  ;;  %v2865_v62 = vld [vmem:[#allocation16_spill] sm:$0xff] }
  0xe9   : > { %2856 = vst [vmem:[#allocation11_spill] sm:$0xff] %v2378_v17  ;;  %2858 = vst [vmem:[#allocation12_spill] sm:$0xff] %v2381_v10  ;;  %v395_v49 = vmul.f32 0.00390625, %v362_v33  ;;  %v490_v44 = vmul.f32 %v2378_v17, %v2378_v17  ;;  %v491_v20 = vmul.f32 %v2381_v10, %v2381_v10 }
  0xea   : > { %v2392_v51 = vsub.f32 %v2859_v11, %v394_v60  ;;  %v2395_v34 = vsub.f32 %v2861_v54, %v394_v60  ;;  %v566_v28 = vadd.f32 %v489_v61, %v488_v3 }
  0xeb   : > { %v2398_v63 = vsub.f32 %v2863_v29, %v395_v49  ;;  %v2401_v57 = vsub.f32 %v2865_v62, %v395_v49  ;;  %v569_v33 = vadd.f32 %v491_v20, %v490_v44  ;;  %v782_v44 = vlaneseq }
  0xec   : > { %2860 = vst [vmem:[#allocation13_spill] sm:$0xff] %v2392_v51  ;;  %2862 = vst [vmem:[#allocation14_spill] sm:$0xff] %v2395_v34  ;;  %612 = vadd.xlane.f32.xlu1 %v611_v39  ;;  %567 = vadd.xlane.f32.xlu0 %v566_v28  ;;  %v520_v17 = vmul.f32 %v2392_v51, %v2392_v51  ;;  %v521_v11 = vmul.f32 %v2395_v34, %v2395_v34 }
  0xed   : > { %2864 = vst [vmem:[#allocation15_spill] sm:$0xff] %v2398_v63  ;;  %2866 = vst [vmem:[#allocation16_spill] sm:$0xff] %v2401_v57  ;;  %v522_v60 = vmul.f32 %v2398_v63, %v2398_v63  ;;  %v523_v3 = vmul.f32 %v2401_v57, %v2401_v57  ;;  %v783_v34 = vshrl.u32 %v782_v44, 7 }
  0xee   : > { %v614_v61 = vadd.f32 %v521_v11, %v520_v17 }
  0xef   : > { %v617_v49 = vadd.f32 %v523_v3, %v522_v60  ;;  %v784_v11 = vsub.s32 0, %v783_v34  ;;  %v788_v60 = vsub.s32 1, %v783_v34 }
  0xf0   : > { %570 = vadd.xlane.f32.xlu1 %v569_v33  ;;  %615 = vadd.xlane.f32.xlu0 %v614_v61 }
  0xf4   : > { %618 = vadd.xlane.f32.xlu1 %v617_v49  ;;  %v780_v49 = vld [vmem:[%s2771_s1] sm:$0x3] }
 0x141   : > { %v526_v39 = vpop.xlane.xlu0 %525 }
 0x142   : > { %v620_v54 = vmul.f32 0.00390625, %v526_v39 }
 0x144   : > { %v652_v20 = vadd.f32 1e-05, %v620_v54 }
 0x145   : > { %v529_v28 = vpop.xlane.xlu1 %528  ;;  %v574_v29 = vpop.xlane.xlu0 %573 }
 0x146   : > { %1577 = vrsqrt.f32 %v652_v20  ;;  %v621_v62 = vmul.f32 0.00390625, %v529_v28  ;;  %v636_v51 = vmul.f32 0.00390625, %v574_v29 }
 0x148   : > { %v653_v10 = vadd.f32 1e-05, %v621_v62  ;;  %v668_v63 = vadd.f32 1e-05, %v636_v51  ;;  %v2867_v62 = vld [vmem:[#allocation18_spill] sm:$0xff] }
 0x149   : > { %v577_v16 = vpop.xlane.xlu1 %576  ;;  %v532_v56 = vpop.xlane.xlu0 %531 }
 0x14a   : > { %1579 = vrsqrt.f32 %v653_v10  ;;  %v637_v17 = vmul.f32 0.00390625, %v577_v16  ;;  %v622_v33 = vmul.f32 0.00390625, %v532_v56  ;;  %v856_v10 = vld [vmem:[%s2772_s2] sm:$0x3]  ;;  %v2417_v16 = vrot.slane %v780_v49, %v784_v11 }
 0x14b   : > { %1581 = vrsqrt.f32 %v668_v63  ;;  %v2419_v56 = vrot.slane %v780_v49, %v788_v60  ;;  %v2426_v48 = vrot.slane %v856_v10, %v784_v11  ;;  %v2869_v11 = vld [vmem:[#allocation20_spill] sm:$0xff] }
 0x14c   : > { %v669_v3 = vadd.f32 1e-05, %v637_v17  ;;  %v654_v61 = vadd.f32 1e-05, %v622_v33  ;;  %v2422_v33 = vrot.slane %v856_v10, %v788_v60 }
 0x14d   : > { %v535_v39 = vpop.xlane.xlu1 %534  ;;  %v580_v54 = vpop.xlane.xlu0 %579 }
 0x14e   : > { %1583 = vrsqrt.f32 %v669_v3  ;;  %v623_v44 = vmul.f32 0.00390625, %v535_v39  ;;  %v638_v20 = vmul.f32 0.00390625, %v580_v54  ;;  %v2868_v3 = vld [vmem:[#allocation17_spill] sm:$0xff] }
 0x14f   : > { %1585 = vrsqrt.f32 %v654_v61 }
 0x150   : > { %v1578_v51 = vpop.eup %1577  ;;  %v655_v34 = vadd.f32 1e-05, %v623_v44  ;;  %v670_v63 = vadd.f32 1e-05, %v638_v20 }
 0x151   : > { %v583_v28 = vpop.xlane.xlu1 %582  ;;  %v538_v29 = vpop.xlane.xlu0 %537  ;;  %v717_v17 = vmul.f32 %v1578_v51, %v2867_v62  ;;  %v716_v39 = vmul.f32 %v1578_v51, %v2868_v3 }
 0x152   : > { %1587 = vrsqrt.f32 %v655_v34  ;;  %v639_v54 = vmul.f32 0.00390625, %v583_v28  ;;  %v624_v57 = vmul.f32 0.00390625, %v538_v29 }
 0x153   : > { %v793_v55 = vmul.f32 %v2419_v56, %v717_v17  ;;  %v792_v49 = vmul.f32 %v2417_v16, %v716_v39  ;;  %1589 = vrsqrt.f32 %v670_v63 }
 0x154   : > { %v1580_v61 = vpop.eup %1579  ;;  %v671_v44 = vadd.f32 1e-05, %v639_v54  ;;  %v656_v20 = vadd.f32 1e-05, %v624_v57 }
 0x155   : > { %v1582_v50 = vpop.eup %1581  ;;  %v541_v27 = vpop.xlane.xlu1 %540  ;;  %v719_v60 = vmul.f32 %v1580_v61, %v2073_v4  ;;  %v869_v51 = vadd.f32 %v2422_v33, %v793_v55  ;;  %v718_v34 = vmul.f32 %v1580_v61, %v2070_v47  ;;  %v868_v57 = vadd.f32 %v2426_v48, %v792_v49  ;;  %v2870_v55 = vld [vmem:[#allocation19_spill] sm:$0xff] }
 0x156   : > { %v586_v62 = vpop.xlane.xlu0 %585  ;;  %1591 = vrsqrt.f32 %v671_v44  ;;  %v625_v28 = vmul.f32 0.00390625, %v541_v27  ;;  %v749_v10 = vmul.f32 %v1582_v50, %v2869_v11  ;;  %v748_v41 = vmul.f32 %v1582_v50, %v2870_v55 }
 0x157   : > { %v640_v29 = vmul.f32 0.00390625, %v586_v62  ;;  %1593 = vrsqrt.f32 %v656_v20  ;;  %v795_v17 = vmul.f32 %v2419_v56, %v719_v60  ;;  %v794_v63 = vmul.f32 %v2417_v16, %v718_v34 }
 0x158   : > { %v1584_v3 = vpop.eup %1583  ;;  %v657_v39 = vadd.f32 1e-05, %v625_v28  ;;  %v825_v4 = vmul.f32 %v2419_v56, %v749_v10 }
 0x159   : > { %v672_v54 = vadd.f32 1e-05, %v640_v29  ;;  %v589_v47 = vpop.xlane.xlu1 %588  ;;  %v871_v27 = vadd.f32 %v2422_v33, %v795_v17  ;;  %v870_v44 = vadd.f32 %v2426_v48, %v794_v63  ;;  %v751_v20 = vmul.f32 %v1584_v3, %v2079_v42  ;;  %v1586_v60 = vpop.eup %1585 }
 0x15a   : > { %v544_v61 = vpop.xlane.xlu0 %543  ;;  %v750_v62 = vmul.f32 %v1584_v3, %v2076_v45  ;;  %1595 = vrsqrt.f32 %v657_v39  ;;  %v641_v49 = vmul.f32 0.00390625, %v589_v47  ;;  %v901_v28 = vadd.f32 %v2422_v33, %v825_v4 }
 0x15b   : > { %v626_v34 = vmul.f32 0.00390625, %v544_v61  ;;  %1597 = vrsqrt.f32 %v672_v54  ;;  %v933_v29 = vpack.c.bf16 %v871_v27, %v869_v51  ;;  %v932_v11 = vpack.c.bf16 %v870_v44, %v868_v57 }
 0x15c   : > { %v827_v50 = vmul.f32 %v2419_v56, %v751_v20  ;;  %v1588_v10 = vpop.eup %1587  ;;  %v673_v55 = vadd.f32 1e-05, %v641_v49  ;;  %v824_v63 = vmul.f32 %v2417_v16, %v748_v41  ;;  %v826_v42 = vmul.f32 %v2417_v16, %v750_v62 }
 0x15d   : > { %v658_v17 = vadd.f32 1e-05, %v626_v34  ;;  %v547_v40 = vpop.xlane.xlu1 %546  ;;  %1124 = vmatprep.mubr.bf16.mxu0 %v933_v29  ;;  %v721_v39 = vmul.f32 %v1586_v60, %v2093_v23  ;;  %v723_v54 = vmul.f32 %v1588_v10, %v2099_v1  ;;  %v720_v51 = vmul.f32 %v1586_v60, %v2090_v9  ;;  %v1590_v57 = vpop.eup %1589 }
 0x15e   : > { %v592_v45 = vpop.xlane.xlu0 %591  ;;  %v903_v3 = vadd.f32 %v2422_v33, %v827_v50  ;;  %1599 = vrsqrt.f32 %v673_v55  ;;  %v627_v4 = vmul.f32 0.00390625, %v547_v40  ;;  %1125 = vmatmul.mubr.bf16.vlgmr.msra.gmra.mrb[0].mxu0 %v932_v11  ;;  %v900_v41 = vadd.f32 %v2426_v48, %v824_v63 }
 0x15f   : > { %v642_v47 = vmul.f32 0.00390625, %v592_v45  ;;  %1601 = vrsqrt.f32 %v658_v17  ;;  %v902_v27 = vadd.f32 %v2426_v48, %v826_v42  ;;  %v797_v44 = vmul.f32 %v2419_v56, %v721_v39 }
 0x160   : > { %v949_v61 = vpack.c.bf16 %v903_v3, %v901_v28  ;;  %v1592_v20 = vpop.eup %1591  ;;  %v659_v62 = vadd.f32 1e-05, %v627_v4  ;;  %v799_v1 = vmul.f32 %v2419_v56, %v723_v54  ;;  %v722_v9 = vmul.f32 %v1588_v10, %v2096_v0 }
 0x161   : > { %v674_v23 = vadd.f32 1e-05, %v642_v47  ;;  %v1594_v60 = vpop.eup %1593  ;;  %v595_v49 = vpop.xlane.xlu1 %594  ;;  %v948_v34 = vpack.c.bf16 %v902_v27, %v900_v41  ;;  %v873_v29 = vadd.f32 %v2422_v33, %v797_v44  ;;  %v796_v28 = vmul.f32 %v2417_v16, %v720_v51 }
 0x162   : > { %1188 = vmatprep.mubr.bf16.mxu1 %v949_v61  ;;  %v550_v40 = vpop.xlane.xlu0 %549  ;;  %v753_v11 = vmul.f32 %v1590_v57, %v2113_v46  ;;  %1603 = vrsqrt.f32 %v659_v62  ;;  %v643_v50 = vmul.f32 0.00390625, %v595_v49  ;;  %v875_v17 = vadd.f32 %v2422_v33, %v799_v1 }
 0x163   : > { %v628_v55 = vmul.f32 0.00390625, %v550_v40  ;;  %1605 = vrsqrt.f32 %v674_v23  ;;  %1189 = vmatmul.mubr.bf16.vlgmr.msra.gmra.mrb[0].mxu1 %v948_v34  ;;  %v798_v0 = vmul.f32 %v2417_v16, %v722_v9  ;;  %v872_v10 = vadd.f32 %v2426_v48, %v796_v28 }
 0x164   : > { %v755_v63 = vmul.f32 %v1592_v20, %v2119_v59  ;;  %v1596_v42 = vpop.eup %1595  ;;  %v675_v45 = vadd.f32 1e-05, %v643_v50  ;;  %v935_v39 = vpack.c.bf16 %v875_v17, %v873_v29  ;;  %v829_v54 = vmul.f32 %v2419_v56, %v753_v11 }
 0x165   : > { %v660_v3 = vadd.f32 1e-05, %v628_v55  ;;  %v2463_v46 = vpop.eup %1597  ;;  %v553_v51 = vpop.xlane.xlu1 %552  ;;  %v874_v47 = vadd.f32 %v2426_v48, %v798_v0  ;;  %v752_v61 = vmul.f32 %v1590_v57, %v2110_v53  ;;  %v754_v27 = vmul.f32 %v1592_v20, %v2116_v6 }
 0x166   : > { %v598_v4 = vpop.xlane.xlu0 %597  ;;  %v831_v41 = vmul.f32 %v2419_v56, %v755_v63  ;;  %1607 = vrsqrt.f32 %v675_v45  ;;  %v629_v59 = vmul.f32 0.00390625, %v553_v51  ;;  %1132 = vmatprep.mubr.bf16.mxu0 %v935_v39  ;;  %v905_v62 = vadd.f32 %v2422_v33, %v829_v54  ;;  %v2871_v45 = vld [vmem:[#allocation21_spill] sm:$0xff] }
 0x167   : > { %v644_v44 = vmul.f32 0.00390625, %v598_v4  ;;  %1609 = vrsqrt.f32 %v660_v3  ;;  %v934_v23 = vpack.c.bf16 %v874_v47, %v872_v10  ;;  %v828_v9 = vmul.f32 %v2417_v16, %v752_v61 }
 0x168   : > { %v907_v1 = vadd.f32 %v2422_v33, %v831_v41  ;;  %v1600_v49 = vpop.eup %1599  ;;  %v661_v40 = vadd.f32 1e-05, %v629_v59  ;;  %v830_v29 = vmul.f32 %v2417_v16, %v754_v27  ;;  %v725_v53 = vmul.f32 %v1594_v60, %v2133_v7 }
 0x169   : > { %v676_v34 = vadd.f32 1e-05, %v644_v44  ;;  %v2474_v6 = vpop.eup %1601  ;;  %1133 = vmatmul.mubr.bf16.gmra.mrb[4].mxu0 %v934_v23  ;;  %v601_v57 = vpop.xlane.xlu1 %600  ;;  %v904_v11 = vadd.f32 %v2426_v48, %v828_v9  ;;  %v727_v50 = vmul.f32 %v1596_v42, %v2139_v14  ;;  %v724_v55 = vmul.f32 %v1594_v60, %v2130_v12 }
 0x16a   : > { %v951_v20 = vpack.c.bf16 %v907_v1, %v905_v62  ;;  %v556_v28 = vpop.xlane.xlu0 %555  ;;  %1611 = vrsqrt.f32 %v661_v40  ;;  %v645_v17 = vmul.f32 0.00390625, %v601_v57  ;;  %v906_v10 = vadd.f32 %v2426_v48, %v830_v29 }
 0x16b   : > { %v630_v0 = vmul.f32 0.00390625, %v556_v28  ;;  %1613 = vrsqrt.f32 %v676_v34  ;;  %v801_v7 = vmul.f32 %v2419_v56, %v725_v53  ;;  %v803_v63 = vmul.f32 %v2419_v56, %v727_v50 }
 0x16c   : > { %1196 = vmatprep.mubr.bf16.mxu1 %v951_v20  ;;  %v726_v3 = vmul.f32 %v1596_v42, %v2871_v45  ;;  %v2483_v39 = vpop.eup %1603  ;;  %v677_v54 = vadd.f32 1e-05, %v645_v17  ;;  %v950_v14 = vpack.c.bf16 %v906_v10, %v904_v11  ;;  %v800_v12 = vmul.f32 %v2417_v16, %v724_v55 }
 0x16d   : > { %v662_v51 = vadd.f32 1e-05, %v630_v0  ;;  %v2486_v60 = vpop.eup %1605  ;;  %v559_v4 = vpop.xlane.xlu1 %558  ;;  %v877_v47 = vadd.f32 %v2422_v33, %v801_v7  ;;  %v879_v41 = vadd.f32 %v2422_v33, %v803_v63  ;;  %v757_v42 = vmul.f32 %v2463_v46, %v2159_v2 }
 0x16e   : > { %v604_v61 = vpop.xlane.xlu0 %603  ;;  %v802_v27 = vmul.f32 %v2417_v16, %v726_v3  ;;  %1615 = vrsqrt.f32 %v677_v54  ;;  %1197 = vmatmul.mubr.bf16.gmra.mrb[4].mxu1 %v950_v14  ;;  %v631_v59 = vmul.f32 0.00390625, %v559_v4  ;;  %v876_v62 = vadd.f32 %v2426_v48, %v800_v12 }
 0x16f   : > { %v646_v44 = vmul.f32 0.00390625, %v604_v61  ;;  %1617 = vrsqrt.f32 %v662_v51  ;;  %v937_v23 = vpack.c.bf16 %v879_v41, %v877_v47  ;;  %v759_v9 = vmul.f32 %v1600_v49, %v2165_v13 }
 0x170   : > { %v878_v1 = vadd.f32 %v2426_v48, %v802_v27  ;;  %v2496_v40 = vpop.eup %1607  ;;  %v663_v34 = vadd.f32 1e-05, %v631_v59  ;;  %v833_v53 = vmul.f32 %v2419_v56, %v757_v42  ;;  %v756_v2 = vmul.f32 %v2463_v46, %v2156_v19 }
 0x171   : > { %v678_v29 = vadd.f32 1e-05, %v646_v44  ;;  %v2501_v57 = vpop.eup %1609  ;;  %1140 = vmatprep.mubr.bf16.mxu0 %v937_v23  ;;  %v607_v28 = vpop.xlane.xlu1 %606  ;;  %v835_v11 = vmul.f32 %v2419_v56, %v759_v9  ;;  %v758_v55 = vmul.f32 %v1600_v49, %v2162_v21  ;;  %v729_v13 = vmul.f32 %v2474_v6, %v2182_v26 }
 0x172   : > { %v936_v20 = vpack.c.bf16 %v878_v1, %v876_v62  ;;  %v562_v50 = vpop.xlane.xlu0 %561  ;;  %1619 = vrsqrt.f32 %v663_v34  ;;  %v647_v17 = vmul.f32 0.00390625, %v607_v28  ;;  %v909_v0 = vadd.f32 %v2422_v33, %v833_v53 }
 0x173   : > { %v632_v10 = vmul.f32 0.00390625, %v562_v50  ;;  %1621 = vrsqrt.f32 %v678_v29  ;;  %v911_v19 = vadd.f32 %v2422_v33, %v835_v11  ;;  %v832_v46 = vmul.f32 %v2417_v16, %v756_v2 }
 0x174   : > { %1141 = vmatmul.mubr.bf16.gmra.mrb[8].mxu0 %v936_v20  ;;  %v834_v7 = vmul.f32 %v2417_v16, %v758_v55  ;;  %v2511_v63 = vpop.eup %1611  ;;  %v679_v45 = vadd.f32 1e-05, %v647_v17  ;;  %v731_v26 = vmul.f32 %v2483_v39, %v2191_v18  ;;  %v805_v49 = vmul.f32 %v2419_v56, %v729_v13 }
 0x175   : > { %v664_v21 = vadd.f32 1e-05, %v632_v10  ;;  %v2516_v3 = vpop.eup %1613  ;;  %v953_v54 = vpack.c.bf16 %v911_v19, %v909_v0  ;;  %v908_v51 = vadd.f32 %v2426_v48, %v832_v46  ;;  %v565_v12 = vpop.xlane.xlu1 %564  ;;  %v728_v47 = vmul.f32 %v2474_v6, %v2179_v25 }
 0x176   : > { %v910_v14 = vadd.f32 %v2426_v48, %v834_v7  ;;  %v610_v4 = vpop.xlane.xlu0 %609  ;;  %1623 = vrsqrt.f32 %v679_v45  ;;  %v633_v41 = vmul.f32 0.00390625, %v565_v12  ;;  %v807_v61 = vmul.f32 %v2419_v56, %v731_v26 }
 0x177   : > { %v881_v18 = vadd.f32 %v2422_v33, %v805_v49  ;;  %1204 = vmatprep.mubr.bf16.mxu1 %v953_v54  ;;  %1625 = vrsqrt.f32 %v664_v21  ;;  %v648_v42 = vmul.f32 0.00390625, %v610_v4  ;;  %v730_v59 = vmul.f32 %v2483_v39, %v2188_v22 }
 0x178   : > { %v952_v27 = vpack.c.bf16 %v910_v14, %v908_v51  ;;  %v2526_v44 = vpop.eup %1615  ;;  %v665_v62 = vadd.f32 1e-05, %v633_v41  ;;  %v883_v23 = vadd.f32 %v2422_v33, %v807_v61  ;;  %v804_v25 = vmul.f32 %v2417_v16, %v728_v47 }
 0x179   : > { %v761_v6 = vmul.f32 %v2486_v60, %v2208_v24  ;;  %v2532_v1 = vpop.eup %1617  ;;  %v680_v9 = vadd.f32 1e-05, %v648_v42  ;;  %v806_v34 = vmul.f32 %v2417_v16, %v730_v59  ;;  %v613_v29 = vpop.xlane.xlu1 %612  ;;  %v763_v22 = vmul.f32 %v2496_v40, %v2217_v35 }
 0x17a   : > { %1205 = vmatmul.mubr.bf16.gmra.mrb[8].mxu1 %v952_v27  ;;  %v568_v39 = vpop.xlane.xlu0 %567  ;;  %v760_v53 = vmul.f32 %v2486_v60, %v2205_v5  ;;  %1627 = vrsqrt.f32 %v665_v62  ;;  %v939_v2 = vpack.c.bf16 %v883_v23, %v881_v18  ;;  %v880_v20 = vadd.f32 %v2426_v48, %v804_v25 }
 0x17b   : > { %v649_v28 = vmul.f32 0.00390625, %v613_v29  ;;  %1629 = vrsqrt.f32 %v680_v9  ;;  %v882_v24 = vadd.f32 %v2426_v48, %v806_v34  ;;  %v837_v11 = vmul.f32 %v2419_v56, %v761_v6 }
 0x17c   : > { %v839_v50 = vmul.f32 %v2419_v56, %v763_v22  ;;  %v2543_v55 = vpop.eup %1619  ;;  %1148 = vmatprep.mubr.bf16.mxu0 %v939_v2  ;;  %v634_v13 = vmul.f32 0.00390625, %v568_v39  ;;  %v762_v5 = vmul.f32 %v2496_v40, %v2214_v58  ;;  %v836_v60 = vmul.f32 %v2417_v16, %v760_v53 }
 0x17d   : > { %v681_v35 = vadd.f32 1e-05, %v649_v28  ;;  %v2548_v17 = vpop.eup %1621  ;;  %v938_v0 = vpack.c.bf16 %v882_v24, %v880_v20  ;;  %v913_v10 = vadd.f32 %v2422_v33, %v837_v11  ;;  %v571_v46 = vpop.xlane.xlu1 %570  ;;  %v733_v7 = vmul.f32 %v2501_v57, %v2234_v31 }
 0x17e   : > { %v915_v19 = vadd.f32 %v2422_v33, %v839_v50  ;;  %v616_v45 = vpop.xlane.xlu0 %615  ;;  %v666_v21 = vadd.f32 1e-05, %v634_v13  ;;  %v838_v26 = vmul.f32 %v2417_v16, %v762_v5  ;;  %v912_v58 = vadd.f32 %v2426_v48, %v836_v60  ;;  %v2873_v5 = vld [vmem:[#allocation23_spill] sm:$0xff] }
 0x17f   : > { %1631 = vrsqrt.f32 %v681_v35  ;;  %1149 = vmatmul.mubr.bf16.gmra.mrb[12].mxu0 %v938_v0  ;;  %v635_v49 = vmul.f32 0.00390625, %v571_v46  ;;  %v735_v54 = vmul.f32 %v2511_v63, %v2243_v32  ;;  %v809_v51 = vmul.f32 %v2419_v56, %v733_v7  ;;  %v2874_v0 = vld [vmem:[#allocation25_spill] sm:$0xff] }
 0x180   : > { %v955_v40 = vpack.c.bf16 %v915_v19, %v913_v10  ;;  %v2559_v14 = vpop.eup %1623  ;;  %1633 = vrsqrt.f32 %v666_v21  ;;  %v914_v31 = vadd.f32 %v2426_v48, %v838_v26  ;;  %v650_v12 = vmul.f32 0.00390625, %v616_v45  ;;  %v2875_v26 = vld [vmem:[#allocation27_spill] sm:$0xff] }
 0x181   : > { %v732_v4 = vmul.f32 %v2501_v57, %v2231_v30  ;;  %v2564_v47 = vpop.eup %1625  ;;  %v667_v41 = vadd.f32 1e-05, %v635_v49  ;;  %v811_v61 = vmul.f32 %v2419_v56, %v735_v54  ;;  %v885_v18 = vadd.f32 %v2422_v33, %v809_v51  ;;  %v619_v27 = vpop.xlane.xlu1 %618  ;;  %v2876_v54 = vld [vmem:[#allocation24_spill] sm:$0xff] }
 0x182   : > { %1212 = vmatprep.mubr.bf16.mxu1 %v955_v40  ;;  %v734_v32 = vmul.f32 %v2511_v63, %v2240_v52  ;;  %v954_v42 = vpack.c.bf16 %v914_v31, %v912_v58  ;;  %v682_v59 = vadd.f32 1e-05, %v650_v12  ;;  %v651_v23 = vmul.f32 0.00390625, %v619_v27  ;;  %v2877_v31 = vld [vmem:[#allocation26_spill] sm:$0xff] }
 0x183   : > { %v808_v62 = vmul.f32 %v2417_v16, %v732_v4  ;;  %1635 = vrsqrt.f32 %v667_v41  ;;  %v887_v30 = vadd.f32 %v2422_v33, %v811_v61  ;;  %v765_v25 = vmul.f32 %v2516_v3, %v2260_v8 }
 0x184   : > { %v810_v57 = vmul.f32 %v2417_v16, %v734_v32  ;;  %v1628_v6 = vpop.eup %1627  ;;  %1213 = vmatmul.mubr.bf16.gmra.mrb[12].mxu1 %v954_v42  ;;  %1637 = vrsqrt.f32 %v682_v59  ;;  %v683_v52 = vadd.f32 1e-05, %v651_v23  ;;  %v767_v63 = vmul.f32 %v2526_v44, %v2269_v38  ;;  %v2879_v23 = vld [vmem:[#allocation5_spill] sm:$0xff] }
 0x185   : > { %v884_v9 = vadd.f32 %v2426_v48, %v808_v62  ;;  %v2578_v34 = vpop.eup %1629  ;;  %v941_v29 = vpack.c.bf16 %v887_v30, %v885_v18  ;;  %v841_v39 = vmul.f32 %v2419_v56, %v765_v25  ;;  %v764_v53 = vmul.f32 %v2516_v3, %v2257_v36  ;;  %v2878_v62 = vld [vmem:[#allocation29_spill] sm:$0xff]  ;;  %v2880_v25 = vld [vmem:[#allocation28_spill] sm:$0xff] }
 0x186   : > { %v886_v22 = vadd.f32 %v2426_v48, %v810_v57  ;;  %1639 = vrsqrt.f32 %v683_v52  ;;  %v843_v8 = vmul.f32 %v2419_v56, %v767_v63  ;;  %v766_v2 = vmul.f32 %v2526_v44, %v2266_v37  ;;  %v2872_v37 = vld [vmem:[#allocation22_spill] sm:$0xff] }
 0x187   : > { %v737_v20 = vmul.f32 %v2532_v1, %v2286_v15  ;;  %1156 = vmatprep.mubr.bf16.mxu0 %v941_v29  ;;  %v917_v28 = vadd.f32 %v2422_v33, %v841_v39  ;;  %v840_v24 = vmul.f32 %v2417_v16, %v764_v53  ;;  %v739_v11 = vmul.f32 %v2543_v55, %v2295_v43  ;;  %v2881_v52 = vld [vmem:[#allocation30_spill] sm:$0xff] }
 0x188   : > { %v940_v38 = vpack.c.bf16 %v886_v22, %v884_v9  ;;  %v919_v36 = vadd.f32 %v2422_v33, %v843_v8  ;;  %v842_v3 = vmul.f32 %v2417_v16, %v766_v2  ;;  %v736_v44 = vmul.f32 %v2532_v1, %v2872_v37 }
 0x189   : > { %v1632_v50 = vpop.eup %1631  ;;  %v813_v35 = vmul.f32 %v2419_v56, %v737_v20  ;;  %v916_v15 = vadd.f32 %v2426_v48, %v840_v24  ;;  %v815_v13 = vmul.f32 %v2419_v56, %v739_v11  ;;  %v738_v60 = vmul.f32 %v2543_v55, %v2873_v5 }
 0x18a   : > { %1157 = vmatmul.mubr.bf16.gmra.mrb[16].mxu0 %v940_v38  ;;  %v769_v43 = vmul.f32 %v2548_v17, %v2874_v0  ;;  %v2604_v10 = vpop.eup %1633  ;;  %v957_v19 = vpack.c.bf16 %v919_v36, %v917_v28  ;;  %v918_v46 = vadd.f32 %v2426_v48, %v842_v3  ;;  %v812_v1 = vmul.f32 %v2417_v16, %v736_v44  ;;  %v2882_v28 = vld [vmem:[#allocation7_spill] sm:$0xff]  ;;  %v2883_v36 = vld [vmem:[#allocation9_spill] sm:$0xff]  ;;  %v2885_v0 = vld [vmem:[#allocation8_spill] sm:$0xff] }
 0x18b   : > { %v889_v7 = vadd.f32 %v2422_v33, %v813_v35  ;;  %v891_v45 = vadd.f32 %v2422_v33, %v815_v13  ;;  %v814_v21 = vmul.f32 %v2417_v16, %v738_v60  ;;  %v771_v58 = vmul.f32 %v2559_v14, %v2875_v26 }
 0x18c   : > { %v845_v55 = vmul.f32 %v2419_v56, %v769_v43  ;;  %1220 = vmatprep.mubr.bf16.mxu1 %v957_v19  ;;  %v956_v40 = vpack.c.bf16 %v918_v46, %v916_v15  ;;  %v888_v49 = vadd.f32 %v2426_v48, %v812_v1  ;;  %v768_v51 = vmul.f32 %v2548_v17, %v2876_v54  ;;  %v2884_v15 = vld [vmem:[#allocation6_spill] sm:$0xff] }
 0x18d   : > { %v770_v12 = vmul.f32 %v2559_v14, %v2877_v31  ;;  %v1636_v4 = vpop.eup %1635  ;;  %v943_v41 = vpack.c.bf16 %v891_v45, %v889_v7  ;;  %v890_v61 = vadd.f32 %v2426_v48, %v814_v21  ;;  %v847_v18 = vmul.f32 %v2419_v56, %v771_v58  ;;  %v2886_v19 = vld [vmem:[#allocation10_spill] sm:$0xff]  ;;  %v2887_v21 = vld [vmem:[#allocation12_spill] sm:$0xff] }
 0x18e   : > { %v921_v32 = vadd.f32 %v2422_v33, %v845_v55  ;;  %v1638_v27 = vpop.eup %1637  ;;  %1221 = vmatmul.mubr.bf16.gmra.mrb[16].mxu1 %v956_v40  ;;  %v844_v42 = vmul.f32 %v2417_v16, %v768_v51  ;;  %v741_v17 = vmul.f32 %v2564_v47, %v2878_v62  ;;  %v743_v30 = vmul.f32 %v1628_v6, %v2879_v23  ;;  %v2889_v51 = vld [vmem:[#allocation11_spill] sm:$0xff] }
 0x18f   : > { %v846_v59 = vmul.f32 %v2417_v16, %v770_v12  ;;  %1164 = vmatprep.mubr.bf16.mxu0 %v943_v41  ;;  %v942_v14 = vpack.c.bf16 %v890_v61, %v888_v49  ;;  %v923_v57 = vadd.f32 %v2422_v33, %v847_v18  ;;  %v740_v9 = vmul.f32 %v2564_v47, %v2880_v25  ;;  %v2888_v49 = vld [vmem:[#allocation31_spill] sm:$0xff]  ;;  %v2890_v18 = vld [vmem:[#allocation14_spill] sm:$0xff] }
 0x190   : > { %v742_v63 = vmul.f32 %v1628_v6, %v2881_v52  ;;  %v1640_v29 = vpop.eup %1639  ;;  %v920_v22 = vadd.f32 %v2426_v48, %v844_v42  ;;  %v817_v53 = vmul.f32 %v2419_v56, %v741_v17  ;;  %v819_v8 = vmul.f32 %v2419_v56, %v743_v30  ;;  %v2891_v17 = vld [vmem:[#allocation16_spill] sm:$0xff]  ;;  %v2892_v30 = vld [vmem:[#allocation13_spill] sm:$0xff] }
 0x191   : > { %v922_v39 = vadd.f32 %v2426_v48, %v846_v59  ;;  %v959_v2 = vpack.c.bf16 %v923_v57, %v921_v32  ;;  %v816_v20 = vmul.f32 %v2417_v16, %v740_v9  ;;  %v773_v47 = vmul.f32 %v2578_v34, %v2882_v28  ;;  %v2893_v57 = vld [vmem:[#allocation15_spill] sm:$0xff] }
 0x192   : > { %1165 = vmatmul.mubr.bf16.gmra.mrb[20].mxu0 %v942_v14  ;;  %v818_v38 = vmul.f32 %v2417_v16, %v742_v63  ;;  %v893_v6 = vadd.f32 %v2422_v33, %v817_v53  ;;  %v895_v11 = vadd.f32 %v2422_v33, %v819_v8  ;;  %v775_v3 = vmul.f32 %v1632_v50, %v2883_v36 }
 0x193   : > { %v958_v24 = vpack.c.bf16 %v922_v39, %v920_v22  ;;  %1228 = vmatprep.mubr.bf16.mxu1 %v959_v2  ;;  %v892_v35 = vadd.f32 %v2426_v48, %v816_v20  ;;  %v849_v44 = vmul.f32 %v2419_v56, %v773_v47  ;;  %v772_v13 = vmul.f32 %v2578_v34, %v2884_v15 }
 0x194   : > { %v894_v37 = vadd.f32 %v2426_v48, %v818_v38  ;;  %v945_v5 = vpack.c.bf16 %v895_v11, %v893_v6  ;;  %v851_v60 = vmul.f32 %v2419_v56, %v775_v3  ;;  %v774_v43 = vmul.f32 %v1632_v50, %v2885_v0 }
 0x195   : > { %v745_v46 = vmul.f32 %v2604_v10, %v2886_v19  ;;  %v925_v1 = vadd.f32 %v2422_v33, %v849_v44  ;;  %v848_v45 = vmul.f32 %v2417_v16, %v772_v13  ;;  %v747_v26 = vmul.f32 %v1636_v4, %v2887_v21 }
 0x196   : > { %v944_v7 = vpack.c.bf16 %v894_v37, %v892_v35  ;;  %1229 = vmatmul.mubr.bf16.gmra.mrb[20].mxu1 %v958_v24  ;;  %1172 = vmatprep.mubr.bf16.mxu0 %v945_v5  ;;  %v927_v58 = vadd.f32 %v2422_v33, %v851_v60  ;;  %v850_v34 = vmul.f32 %v2417_v16, %v774_v43 }
 0x197   : > { %v821_v55 = vmul.f32 %v2419_v56, %v745_v46  ;;  %v924_v50 = vadd.f32 %v2426_v48, %v848_v45  ;;  %v823_v40 = vmul.f32 %v2419_v56, %v747_v26  ;;  %v744_v54 = vmul.f32 %v2604_v10, %v2888_v49 }
 0x198   : > { %v746_v31 = vmul.f32 %v1636_v4, %v2889_v51  ;;  %v961_v12 = vpack.c.bf16 %v927_v58, %v925_v1  ;;  %v926_v41 = vadd.f32 %v2426_v48, %v850_v34  ;;  %v777_v32 = vmul.f32 %v1638_v27, %v2890_v18 }
 0x199   : > { %v897_v61 = vadd.f32 %v2422_v33, %v821_v55  ;;  %v899_v42 = vadd.f32 %v2422_v33, %v823_v40  ;;  %v820_v59 = vmul.f32 %v2417_v16, %v744_v54  ;;  %v779_v23 = vmul.f32 %v1640_v29, %v2891_v17 }
 0x19a   : > { %1173 = vmatmul.mubr.bf16.gmra.mrb[24].mxu0 %v944_v7  ;;  %v822_v62 = vmul.f32 %v2417_v16, %v746_v31  ;;  %1236 = vmatprep.mubr.bf16.mxu1 %v961_v12  ;;  %v960_v10 = vpack.c.bf16 %v926_v41, %v924_v50  ;;  %v853_v4 = vmul.f32 %v2419_v56, %v777_v32 }
 0x19b   : > { %v776_v14 = vmul.f32 %v1638_v27, %v2892_v30  ;;  %v778_v25 = vmul.f32 %v1640_v29, %v2893_v57  ;;  %v947_v9 = vpack.c.bf16 %v899_v42, %v897_v61  ;;  %v896_v52 = vadd.f32 %v2426_v48, %v820_v59 }
 0x19c   : > { %v898_v63 = vadd.f32 %v2426_v48, %v822_v62  ;;  %v855_v22 = vmul.f32 %v2419_v56, %v779_v23  ;;  %v929_v2 = vadd.f32 %v2422_v33, %v853_v4 }
 0x19d   : > { %v852_v39 = vmul.f32 %v2417_v16, %v776_v14  ;;  %v854_v53 = vmul.f32 %v2417_v16, %v778_v25  ;;  %1180 = vmatprep.mubr.bf16.mxu0 %v947_v9 }
 0x19e   : > { %v946_v8 = vpack.c.bf16 %v898_v63, %v896_v52  ;;  %v931_v27 = vadd.f32 %v2422_v33, %v855_v22  ;;  %1237 = vmatmul.mubr.bf16.gmra.mrb[24].mxu1 %v960_v10 }
 0x19f   : > { %v930_v29 = vadd.f32 %v2426_v48, %v854_v53  ;;  %v928_v38 = vadd.f32 %v2426_v48, %v852_v39 }
 0x1a0   : > { %v963_v20 = vpack.c.bf16 %v931_v27, %v929_v2 }
 0x1a1   : > { %v962_v56 = vpack.c.bf16 %v930_v29, %v928_v38 }
 0x1a2   : > { %1181 = vmatmul.mubr.bf16.gmra.mrb[28].mxu0 %v946_v8  ;;  %1244 = vmatprep.mubr.bf16.mxu1 %v963_v20 }
 0x1a6   : > { %1245 = vmatmul.mubr.bf16.gmra.mrb[28].mxu1 %v962_v56 }
 0x231   : > { %v1408_v16 = vpop.f32.mrb[0].mxu0 }
 0x232   : > { %v1409_v28 = vpop.f32.mrb[1].mxu0 }
 0x233   : > { %v1410_v47 = vadd.f32 %v1409_v28, %v1408_v16  ;;  %v1411_v24 = vpop.f32.mrb[2].mxu0 }
 0x234   : > { %v1412_v6 = vpop.f32.mrb[3].mxu0 }
 0x235   : > { %1253 = vst [vmem:[%s2684_s10] sm:$0xff] %v1410_v47  ;;  %v1413_v48 = vadd.f32 %v1412_v6, %v1411_v24 }
 0x236   : > { %v1456_v33 = vpop.f32.mrb[0].mxu1 }
 0x237   : > { %1254 = vst [vmem:[%s2684_s10 + $0x8] sm:$0xff] %v1413_v48  ;;  %v1457_v11 = vpop.f32.mrb[1].mxu1 }
 0x238   : > { %v1458_v36 = vadd.f32 %v1457_v11, %v1456_v33  ;;  %v1459_v3 = vpop.f32.mrb[2].mxu1 }
 0x239   : > { %v1460_v35 = vpop.f32.mrb[3].mxu1 }
 0x23a   : > { %1269 = vst [vmem:[%s2684_s10 + $0x80] sm:$0xff] %v1458_v36  ;;  %v1461_v37 = vadd.f32 %v1460_v35, %v1459_v3 }
 0x23c   : > { %1270 = vst [vmem:[%s2684_s10 + $0x88] sm:$0xff] %v1461_v37  ;;  %v1414_v44 = vpop.f32.mrb[4].mxu0 }
 0x23d   : > { %v1415_v15 = vpop.f32.mrb[5].mxu0 }
 0x23e   : > { %v1416_v13 = vadd.f32 %v1415_v15, %v1414_v44  ;;  %v1417_v5 = vpop.f32.mrb[6].mxu0 }
 0x23f   : > { %v1418_v60 = vpop.f32.mrb[7].mxu0 }
 0x240   : > { %1255 = vst [vmem:[%s2684_s10 + $0x10] sm:$0xff] %v1416_v13  ;;  %v1419_v0 = vadd.f32 %v1418_v60, %v1417_v5 }
 0x241   : > { %v1462_v43 = vpop.f32.mrb[4].mxu1 }
 0x242   : > { %1256 = vst [vmem:[%s2684_s10 + $0x18] sm:$0xff] %v1419_v0  ;;  %v1463_v19 = vpop.f32.mrb[5].mxu1 }
 0x243   : > { %v1464_v46 = vadd.f32 %v1463_v19, %v1462_v43  ;;  %v1465_v7 = vpop.f32.mrb[6].mxu1 }
 0x244   : > { %v1466_v1 = vpop.f32.mrb[7].mxu1 }
 0x245   : > { %1271 = vst [vmem:[%s2684_s10 + $0x90] sm:$0xff] %v1464_v46  ;;  %v1467_v45 = vadd.f32 %v1466_v1, %v1465_v7 }
 0x247   : > { %v1420_v21 = vpop.f32.mrb[8].mxu0  ;;  %1272 = vst [vmem:[%s2684_s10 + $0x98] sm:$0xff] %v1467_v45 }
 0x248   : > { %v1421_v26 = vpop.f32.mrb[9].mxu0 }
 0x249   : > { %v1422_v58 = vadd.f32 %v1421_v26, %v1420_v21  ;;  %v1423_v34 = vpop.f32.mrb[10].mxu0 }
 0x24a   : > { %v1424_v55 = vpop.f32.mrb[11].mxu0 }
 0x24b   : > { %1257 = vst [vmem:[%s2684_s10 + $0x20] sm:$0xff] %v1422_v58  ;;  %v1425_v50 = vadd.f32 %v1424_v55, %v1423_v34 }
 0x24d   : > { %1258 = vst [vmem:[%s2684_s10 + $0x28] sm:$0xff] %v1425_v50  ;;  %v1468_v40 = vpop.f32.mrb[8].mxu1 }
 0x24e   : > { %v1469_v49 = vpop.f32.mrb[9].mxu1 }
 0x24f   : > { %v1470_v54 = vadd.f32 %v1469_v49, %v1468_v40  ;;  %v1471_v51 = vpop.f32.mrb[10].mxu1 }
 0x250   : > { %v1472_v31 = vpop.f32.mrb[11].mxu1 }
 0x251   : > { %1273 = vst [vmem:[%s2684_s10 + $0xa0] sm:$0xff] %v1470_v54  ;;  %v1473_v12 = vadd.f32 %v1472_v31, %v1471_v51 }
 0x252   : > { %v1426_v41 = vpop.f32.mrb[12].mxu0 }
 0x253   : > { %1274 = vst [vmem:[%s2684_s10 + $0xa8] sm:$0xff] %v1473_v12  ;;  %v1427_v61 = vpop.f32.mrb[13].mxu0 }
 0x254   : > { %v1428_v18 = vadd.f32 %v1427_v61, %v1426_v41  ;;  %v1429_v32 = vpop.f32.mrb[14].mxu0 }
 0x255   : > { %v1430_v42 = vpop.f32.mrb[15].mxu0 }
 0x256   : > { %1259 = vst [vmem:[%s2684_s10 + $0x30] sm:$0xff] %v1428_v18  ;;  %v1431_v59 = vadd.f32 %v1430_v42, %v1429_v32 }
 0x257   : > { %v1474_v62 = vpop.f32.mrb[12].mxu1 }
 0x258   : > { %1260 = vst [vmem:[%s2684_s10 + $0x38] sm:$0xff] %v1431_v59  ;;  %v1475_v17 = vpop.f32.mrb[13].mxu1 }
 0x259   : > { %v1476_v23 = vadd.f32 %v1475_v17, %v1474_v62  ;;  %v1477_v10 = vpop.f32.mrb[14].mxu1 }
 0x25a   : > { %v1478_v4 = vpop.f32.mrb[15].mxu1 }
 0x25b   : > { %1275 = vst [vmem:[%s2684_s10 + $0xb0] sm:$0xff] %v1476_v23  ;;  %v1479_v30 = vadd.f32 %v1478_v4, %v1477_v10 }
 0x25d   : > { %v1432_v14 = vpop.f32.mrb[16].mxu0  ;;  %1276 = vst [vmem:[%s2684_s10 + $0xb8] sm:$0xff] %v1479_v30 }
 0x25e   : > { %v1433_v57 = vpop.f32.mrb[17].mxu0 }
 0x25f   : > { %v1434_v25 = vadd.f32 %v1433_v57, %v1432_v14  ;;  %v1435_v9 = vpop.f32.mrb[18].mxu0 }
 0x260   : > { %v1436_v52 = vpop.f32.mrb[19].mxu0 }
 0x261   : > { %1261 = vst [vmem:[%s2684_s10 + $0x40] sm:$0xff] %v1434_v25  ;;  %v1437_v63 = vadd.f32 %v1436_v52, %v1435_v9  ;;  %v1480_v22 = vpop.f32.mrb[16].mxu1 }
 0x262   : > { %v1481_v39 = vpop.f32.mrb[17].mxu1 }
 0x263   : > { %1262 = vst [vmem:[%s2684_s10 + $0x48] sm:$0xff] %v1437_v63  ;;  %v1482_v53 = vadd.f32 %v1481_v39, %v1480_v22  ;;  %v1483_v8 = vpop.f32.mrb[18].mxu1 }
 0x264   : > { %v1484_v2 = vpop.f32.mrb[19].mxu1 }
 0x265   : > { %v1438_v27 = vpop.f32.mrb[20].mxu0  ;;  %1277 = vst [vmem:[%s2684_s10 + $0xc0] sm:$0xff] %v1482_v53  ;;  %v1485_v29 = vadd.f32 %v1484_v2, %v1483_v8 }
 0x266   : > { %v1439_v20 = vpop.f32.mrb[21].mxu0 }
 0x267   : > { %v1440_v38 = vadd.f32 %v1439_v20, %v1438_v27  ;;  %v1441_v56 = vpop.f32.mrb[22].mxu0  ;;  %1278 = vst [vmem:[%s2684_s10 + $0xc8] sm:$0xff] %v1485_v29 }
 0x268   : > { %v1442_v16 = vpop.f32.mrb[23].mxu0 }
 0x269   : > { %1263 = vst [vmem:[%s2684_s10 + $0x50] sm:$0xff] %v1440_v38  ;;  %v1443_v28 = vadd.f32 %v1442_v16, %v1441_v56  ;;  %v1486_v47 = vpop.f32.mrb[20].mxu1 }
 0x26a   : > { %v1487_v24 = vpop.f32.mrb[21].mxu1 }
 0x26b   : > { %1264 = vst [vmem:[%s2684_s10 + $0x58] sm:$0xff] %v1443_v28  ;;  %v1488_v6 = vadd.f32 %v1487_v24, %v1486_v47  ;;  %v1489_v48 = vpop.f32.mrb[22].mxu1 }
 0x26c   : > { %v1490_v33 = vpop.f32.mrb[23].mxu1 }
 0x26d   : > { %v1444_v11 = vpop.f32.mrb[24].mxu0  ;;  %1279 = vst [vmem:[%s2684_s10 + $0xd0] sm:$0xff] %v1488_v6  ;;  %v1491_v36 = vadd.f32 %v1490_v33, %v1489_v48 }
 0x26e   : > { %v1445_v3 = vpop.f32.mrb[25].mxu0 }
 0x26f   : > { %v1446_v35 = vadd.f32 %v1445_v3, %v1444_v11  ;;  %v1447_v37 = vpop.f32.mrb[26].mxu0  ;;  %1280 = vst [vmem:[%s2684_s10 + $0xd8] sm:$0xff] %v1491_v36 }
 0x270   : > { %v1448_v44 = vpop.f32.mrb[27].mxu0 }
 0x271   : > { %1265 = vst [vmem:[%s2684_s10 + $0x60] sm:$0xff] %v1446_v35  ;;  %v1449_v15 = vadd.f32 %v1448_v44, %v1447_v37  ;;  %v1492_v13 = vpop.f32.mrb[24].mxu1 }
 0x272   : > { %v1493_v5 = vpop.f32.mrb[25].mxu1 }
 0x273   : > { %1266 = vst [vmem:[%s2684_s10 + $0x68] sm:$0xff] %v1449_v15  ;;  %v1494_v60 = vadd.f32 %v1493_v5, %v1492_v13  ;;  %v1495_v0 = vpop.f32.mrb[26].mxu1 }
 0x274   : > { %v1496_v43 = vpop.f32.mrb[27].mxu1 }
 0x275   : > { %v1450_v19 = vpop.f32.mrb[28].mxu0  ;;  %1281 = vst [vmem:[%s2684_s10 + $0xe0] sm:$0xff] %v1494_v60  ;;  %v1497_v46 = vadd.f32 %v1496_v43, %v1495_v0 }
 0x276   : > { %v1451_v7 = vpop.f32.mrb[29].mxu0 }
 0x277   : > { %v1452_v1 = vadd.f32 %v1451_v7, %v1450_v19  ;;  %v1453_v45 = vpop.f32.mrb[30].mxu0  ;;  %1282 = vst [vmem:[%s2684_s10 + $0xe8] sm:$0xff] %v1497_v46 }
 0x278   : > { %v1454_v21 = vpop.f32.mrb[31].mxu0 }
 0x279   : > { %1267 = vst [vmem:[%s2684_s10 + $0x70] sm:$0xff] %v1452_v1  ;;  %v1455_v26 = vadd.f32 %v1454_v21, %v1453_v45  ;;  %v1498_v58 = vpop.f32.mrb[28].mxu1 }
 0x27a   : > { %v1499_v34 = vpop.f32.mrb[29].mxu1 }
 0x27b   : > { %1268 = vst [vmem:[%s2684_s10 + $0x78] sm:$0xff] %v1455_v26  ;;  %v1500_v55 = vadd.f32 %v1499_v34, %v1498_v58  ;;  %v1501_v50 = vpop.f32.mrb[30].mxu1 }
 0x27c   : > { %v1502_v40 = vpop.f32.mrb[31].mxu1 }
 0x27d   : > { %1283 = vst [vmem:[%s2684_s10 + $0xf0] sm:$0xff] %v1500_v55  ;;  %v1503_v49 = vadd.f32 %v1502_v40, %v1501_v50 }
 0x27f   : > { %1284 = vst [vmem:[%s2684_s10 + $0xf8] sm:$0xff] %v1503_v49 }
 0x280   : > { %1654 = shalt.err (!%p1651_p3)
}
 0x281   : > { %s1655_s29 = scalar_lea.hbm %s2721_s20, 4096  ;;  %s1659_s6 = scalar_lea.hbm %s2774_s4, 8192 }
 0x282   : > { %p1656_p4 = scmp.ne.s32.totalorder %s2721_s20, %s1655_s29  ;;  %p1660_p9 = scmp.lt.u32.totalorder %s2721_s20, %s2774_s4 }
 0x283   : > { %p1661_p10 = scmp.lt.u32.totalorder %s1659_s6, %s1655_s29  ;;  %p1663_p12 = scmp.lt.u32.totalorder %s1655_s29, %s2721_s20 }
 0x284   : > { %p1657_p7 = pnand %p1656_p4, %p1771_p5 }
 0x285   : > { %p1662_p11 = por %p1661_p10, %p1660_p9 }
 0x286   : > { %p1658_p8 = pneg %p1657_p7 }
 0x287   : > { %p1664_p13 = por %p1663_p12, %p1662_p11 }
 0x289   : > { %p1665_p0 = pnand %p1664_p13, %p1658_p8 }
 0x28b   : > { %1668 = shalt.err (!%p1665_p0)
}
 0x28c   : > { %s1706_s9 = smov 128   ;;  %s1707_s10 = smov 8  }
 0x28d   : > { %1520 = dma.vmem_to_hbm [thread:$0]  (%p1771_p5), %s2723_s12, 4096, %s2721_s20, %s2729_s19, %s1706_s9, %s1706_s9, %s1707_s10  }
 0x28e PF: > { %p1526_p1 = scmp.ge.s32.totalorder %s1703_s18, 2  ;;  %s1314_s11 = sand.u32 1, %s1691_s15  }
 0x28f   : > { %s1315_s13 = scalar_lea.sflag [#allocation3], %s1314_s11 }
 0x290   : > { %p1523_p2 = pnand %p1526_p1, %p1775_p6 }
 0x292   : > { %1686 = dma.done.wait (!%p1523_p2), %s1315_s13, 4096  }
 0x293   : > { %1688 = vsyncadd (!%p1523_p2), %s1315_s13, 4294963200  ;;  %p14_p3 = scmp.ge.s32.totalorder %s1758_s21, 4   ;;  %s2894_s15 = smov %s1695_s16 }
 0x294   : > { %s2895_s16 = smov %s1699_s17  ;;  %s2896_s17 = smov %s1769_s24 }
 0x295   : > { %s2897_s18 = smov %s1758_s21  ;;  %16 = sbr.rel (!%p14_p3) target bundleno = 3 (0x3), region = 71 }
 0x29c   :  { %1320 = vsyncpa [#allocation3], 1 }
 0x29d   :  { %1322 = vsyncpa [#allocation3 + $0x1], 1 }

</bundles_post_ra>
